<compile_context>
chip_gen: v7x
topology: tpu7x:2x2x1
jax: 0.10.0
libtpu: 0.0.40
codegen_flags: <defaults>
</compile_context>

<pallas_src>
import functools

import jax
import jax.numpy as jnp
from jax.experimental import pallas as pl
from jax.experimental.pallas import tpu as pltpu


# ------------------------------ small helpers ------------------------------

def _pick_tile(m, max_tile=512):
    """Largest tile that divides m and satisfies the TPU second-minor constraint
    (multiple of 8, or equal to the full dim). Avoids any host-side padding."""
    if m <= max_tile:
        return m
    start = max_tile - (max_tile % 8)
    for d in range(start, 7, -8):
        if m % d == 0:
            return d
    return None


def _pick_k_tile(k, max_tk=4608):
    if k <= max_tk:
        return k
    start = max_tk - (max_tk % 128)
    for d in range(start, 127, -128):
        if k % d == 0:
            return d
    return k  # fallback: single full-K block


def bn_scale_shift(bn, eps=1e-5):
    inv = 1.0 / jnp.sqrt(bn['var'] + eps)
    scale = bn['gamma'] * inv
    shift = bn['beta'] - bn['mean'] * scale
    return scale, shift


# ------------------------------ Pallas kernels ------------------------------

def _fused_mm_kernel(a_ref, b_ref, s_ref, t_ref, al_ref, *rest, use_prelu, use_res):
    """Tiled matmul with fused epilogue: y = acc*scale + shift (+res) (+PReLU)."""
    if use_res:
        r_ref, o_ref, acc_ref = rest
    else:
        o_ref, acc_ref = rest
    k = pl.program_id(1)

    @pl.when(k == 0)
    def _():
        acc_ref[...] = jnp.zeros_like(acc_ref)

    acc_ref[...] += jnp.dot(a_ref[...], b_ref[...],
                            preferred_element_type=jnp.float32)

    @pl.when(k == pl.num_programs(1) - 1)
    def _():
        y = acc_ref[...] * s_ref[...] + t_ref[...]
        if use_res:
            y = y + r_ref[...].astype(jnp.float32)
        if use_prelu:
            y = jnp.where(y >= 0, y, al_ref[...] * y)
        o_ref[...] = y.astype(o_ref.dtype)


def _conv3x3_kernel(x_ref, w_ref, s_ref, t_ref, al_ref, o_ref, *, wq, tm,
                    use_bn, use_prelu):
    """Direct 3x3 / stride-1 conv on a VMEM-resident, zero-padded, flattened image.

    x_ref: (1, Lp, Cin)  flattened padded image (rows of width wq = W+2)
    w_ref: (9, Cin, Cout); o_ref: (1, tm, Cout) in padded-width flat layout.
    Output flat position q = ho*wq + wo reads input positions q + di*wq + dj.
    """
    i = pl.program_id(1)
    q0 = i * tm
    if tm % 8 == 0:
        q0 = pl.multiple_of(q0, 8)
    slab = x_ref[0, pl.ds(q0, tm + 2 * wq + 2), :]        # one aligned dynamic load
    cout = w_ref.shape[2]
    acc = jnp.zeros((tm, cout), jnp.float32)
    for di in range(3):
        for dj in range(3):
            off = di * wq + dj                            # static tap offsets
            acc = acc + jnp.dot(slab[off:off + tm, :], w_ref[di * 3 + dj],
                                preferred_element_type=jnp.float32)
    y = acc
    if use_bn:
        y = y * s_ref[...] + t_ref[...]
    if use_prelu:
        y = jnp.where(y >= 0, y, al_ref[...] * y)
    o_ref[0, :, :] = y.astype(o_ref.dtype)


def _l2norm_kernel(x_ref, o_ref):
    x = x_ref[...]
    norm = jnp.sqrt(jnp.sum(x * x, axis=1, keepdims=True))
    o_ref[...] = x / jnp.maximum(norm, 1e-12)


# ------------------------------ kernel wrappers ------------------------------

def fused_matmul(a, b, scale, shift, *, alpha=None, residual=None,
                 out_dtype=jnp.bfloat16, max_tm=512, max_tk=4608):
    """(M,K)@(K,N) with f32 accumulation; BN / bias / PReLU / residual fused in the epilogue."""
    M, K = a.shape
    K2, N = b.shape
    assert K == K2
    tm = _pick_tile(M, max_tm)
    pad_m = 0
    if tm is None:                                         # defensive fallback (unused here)
        tm = 256
        pad_m = (-M) % tm
        a = jnp.pad(a, ((0, pad_m), (0, 0)))
        if residual is not None:
            residual = jnp.pad(residual, ((0, pad_m), (0, 0)))
    Mp = M + pad_m
    tk = _pick_k_tile(K, max_tk)

    scale = scale.reshape(1, N).astype(jnp.float32)
    shift = shift.reshape(1, N).astype(jnp.float32)
    use_prelu = alpha is not None
    al = (alpha if use_prelu else jnp.ones((N,))).reshape(1, N).astype(jnp.float32)
    use_res = residual is not None

    in_specs = [pl.BlockSpec((tm, tk), lambda i, k: (i, k)),
                pl.BlockSpec((tk, N), lambda i, k: (k, 0)),
                pl.BlockSpec((1, N), lambda i, k: (0, 0)),
                pl.BlockSpec((1, N), lambda i, k: (0, 0)),
                pl.BlockSpec((1, N), lambda i, k: (0, 0))]
    args = [a, b, scale, shift, al]
    if use_res:
        in_specs.append(pl.BlockSpec((tm, N), lambda i, k: (i, 0)))
        args.append(residual)

    out = pl.pallas_call(
        functools.partial(_fused_mm_kernel, use_prelu=use_prelu, use_res=use_res),
        out_shape=jax.ShapeDtypeStruct((Mp, N), out_dtype),
        grid_spec=pltpu.PrefetchScalarGridSpec(
            num_scalar_prefetch=0,
            grid=(Mp // tm, K // tk),
            in_specs=in_specs,
            out_specs=pl.BlockSpec((tm, N), lambda i, k: (i, 0)),
            scratch_shapes=[pltpu.VMEM((tm, N), jnp.float32)]),
        compiler_params=pltpu.CompilerParams(
            dimension_semantics=("parallel", "arbitrary")),
    )(*args)
    if pad_m:
        out = out[:M]
    return out


def conv3x3_s1(x_flat_pad, w9, H, W, *, bn_scale=None, bn_shift=None,
               prelu_alpha=None, out_dtype=jnp.bfloat16, max_tm=512):
    """Direct 3x3 stride-1 pad-1 conv.  Input: flattened padded image (B, (H+3)*(W+2), Cin).
    Output: (B, H*(W+2), Cout) in padded-width flat layout (last 2 cols per row are garbage)."""
    B, Lp, Cin = x_flat_pad.shape
    Cout = w9.shape[2]
    wq = W + 2
    assert Lp == (H + 3) * wq
    M = H * wq
    tm = _pick_tile(M, max_tm)
    if tm is None or M % tm != 0:
        raise ValueError(f"no valid tile for M={M}")

    use_bn = bn_scale is not None
    s = (bn_scale if use_bn else jnp.ones((Cout,))).reshape(1, Cout).astype(jnp.float32)
    t = (bn_shift if use_bn else jnp.zeros((Cout,))).reshape(1, Cout).astype(jnp.float32)
    use_prelu = prelu_alpha is not None
    al = (prelu_alpha if use_prelu else jnp.ones((Cout,))).reshape(1, Cout).astype(jnp.float32)

    return pl.pallas_call(
        functools.partial(_conv3x3_kernel, wq=wq, tm=tm,
                          use_bn=use_bn, use_prelu=use_prelu),
        out_shape=jax.ShapeDtypeStruct((B, M, Cout), out_dtype),
        grid_spec=pltpu.PrefetchScalarGridSpec(
            num_scalar_prefetch=0,
            grid=(B, M // tm),
            in_specs=[pl.BlockSpec((1, Lp, Cin), lambda b, i: (b, 0, 0)),   # resident image
                      pl.BlockSpec((9, Cin, Cout), lambda b, i: (0, 0, 0)),  # resident weight
                      pl.BlockSpec((1, Cout), lambda b, i: (0, 0)),
                      pl.BlockSpec((1, Cout), lambda b, i: (0, 0)),
                      pl.BlockSpec((1, Cout), lambda b, i: (0, 0))],
            out_specs=pl.BlockSpec((1, tm, Cout), lambda b, i: (b, i, 0))),
        compiler_params=pltpu.CompilerParams(
            dimension_semantics=("parallel", "parallel")),
    )(x_flat_pad, w9, s, t, al)


def pallas_l2norm(x):
    B, D = x.shape
    return pl.pallas_call(
        _l2norm_kernel,
        out_shape=jax.ShapeDtypeStruct((B, D), jnp.float32),
        grid=(1,),
        in_specs=[pl.BlockSpec((B, D), lambda i: (0, 0))],
        out_specs=pl.BlockSpec((B, D), lambda i: (0, 0)),
    )(x)


# --------------------------------- XLA glue ---------------------------------
# Layout/pad repacks and the BN that precedes a conv are single fused XLA passes
# (1x activation read/write each); all heavy compute is in the Pallas kernels.

def pad_flat(x_nhwc, scale=None, shift=None, dtype=jnp.bfloat16):
    """Optionally apply per-channel BN, zero-pad H by (1,2) and W by (1,1), flatten."""
    B, H, W, C = x_nhwc.shape
    y = x_nhwc
    if scale is not None:
        y = (y.astype(jnp.float32) * scale.reshape(1, 1, 1, C)
             + shift.reshape(1, 1, 1, C))
    y = y.astype(dtype)
    y = jnp.pad(y, ((0, 0), (1, 2), (1, 1), (0, 0)))
    return y.reshape(B, (H + 3) * (W + 2), C)


def unpack_flat(y_fp, H, W):
    B, _, C = y_fp.shape
    return y_fp.reshape(B, H, W + 2, C)[:, :, :W, :]


def bn_apply(x, scale, shift, dtype=jnp.bfloat16):
    C = x.shape[-1]
    y = x.astype(jnp.float32) * scale.reshape(1, 1, 1, C) + shift.reshape(1, 1, 1, C)
    return y.astype(dtype)


def im2col(x_nhwc, kh, kw, stride, padding, dtype=jnp.bfloat16):
    """Used only for the 4 stride-2 convs and the tiny Cin=3 input conv."""
    B, H, W, C = x_nhwc.shape
    Ho = (H + 2 * padding - kh) // stride + 1
    Wo = (W + 2 * padding - kw) // stride + 1
    xp = jnp.pad(x_nhwc.astype(dtype),
                 ((0, 0), (padding, padding), (padding, padding), (0, 0)))
    cols = []
    for i in range(kh):
        for j in range(kw):
            cols.append(xp[:, i:i + stride * Ho:stride, j:j + stride * Wo:stride, :])
    patches = jnp.stack(cols, axis=3)                     # (B, Ho, Wo, kh*kw, C)
    return patches.reshape(B * Ho * Wo, kh * kw * C), Ho, Wo


# --------------------- direct-conv availability self-test ---------------------

_DIRECT_OK = None


def _direct_conv_ok():
    """Compile + numerically verify the direct-conv kernel on a tiny case; if anything
    fails we fall back to im2col + the fused matmul kernel (still fully fused epilogues)."""
    global _DIRECT_OK
    if _DIRECT_OK is not None:
        return _DIRECT_OK
    try:
        key = jax.random.PRNGKey(42)
        B, H, W, Cin, Cout = 1, 16, 14, 8, 8
        x = jax.random.normal(jax.random.fold_in(key, 0), (B, H, W, Cin),
                              jnp.float32).astype(jnp.bfloat16)
        w = (0.2 * jax.random.normal(jax.random.fold_in(key, 1), (3, 3, Cin, Cout),
                                     jnp.float32)).astype(jnp.bfloat16)
        y = conv3x3_s1(pad_flat(x), w.reshape(9, Cin, Cout), H, W,
                       out_dtype=jnp.float32, max_tm=64)
        y = unpack_flat(y, H, W)
        ref = jax.lax.conv_general_dilated(
            x.astype(jnp.float32), w.astype(jnp.float32),
            window_strides=(1, 1), padding=((1, 1), (1, 1)),
            dimension_numbers=('NHWC', 'HWIO', 'NHWC'))
        _DIRECT_OK = bool(jnp.max(jnp.abs(y - ref)) < 5e-2)
    except Exception:
        _DIRECT_OK = False
    return _DIRECT_OK


# ------------------------------ layer forwards ------------------------------

def input_layer_forward(x, p):
    # Conv2d(3,64,3,1,1) + BN + PReLU ; K=27 stays unpadded, BN/PReLU in the epilogue.
    B, H, W, _ = x.shape
    a, Ho, Wo = im2col(x, 3, 3, 1, 1)
    y = fused_matmul(a, p['w27'], p['bn_scale'], p['bn_shift'], alpha=p['prelu'])
    return y.reshape(B, Ho, Wo, p['w27'].shape[1])


def bottleneck_ir_forward(x, unit, *, stride, use_direct):
    B, H, W, Cin = x.shape
    depth = unit['prelu'].shape[0]
    s1, t1 = unit['bn1_scale'], unit['bn1_shift']
    s2, t2 = unit['bn2_scale'], unit['bn2_shift']

    # --- res branch: BN1 -> conv1(3x3,s1) -> PReLU ---------------------------------
    if use_direct:
        g1 = pad_flat(x, s1, t1)                           # BN1 fused into the halo-pad pass
        y1 = unpack_flat(conv3x3_s1(g1, unit['w1'], H, W,
                                    prelu_alpha=unit['prelu']), H, W)
    else:
        a1, _, _ = im2col(bn_apply(x, s1, t1), 3, 3, 1, 1)
        y1 = fused_matmul(a1, unit['w1'].reshape(9 * Cin, depth),
                          jnp.ones((depth,), jnp.float32),
                          jnp.zeros((depth,), jnp.float32),
                          alpha=unit['prelu']).reshape(B, H, W, depth)

    # --- conv2(3x3, stride) + BN2 (+ shortcut) --------------------------------------
    if stride == 1:
        if use_direct:
            g2 = pad_flat(y1)
            res = unpack_flat(conv3x3_s1(g2, unit['w2'], H, W,
                                         bn_scale=s2, bn_shift=t2), H, W)
            return res + x                                  # identity shortcut (MaxPool2d(1,1))
        a2, Ho, Wo = im2col(y1, 3, 3, 1, 1)
        out = fused_matmul(a2, unit['w2'].reshape(9 * depth, depth), s2, t2,
                           residual=x.reshape(B * H * W, depth))
        return out.reshape(B, H, W, depth)

    # stride-2 conv2: small im2col + fused matmul; shortcut BN + residual fused in epilogue
    a2, Ho, Wo = im2col(y1, 3, 3, stride, 1)
    if unit['shortcut'] is None:                            # MaxPool2d(1, 2) = subsample
        sc = x[:, ::stride, ::stride, :].reshape(B * Ho * Wo, depth)
    else:                                                   # 1x1 conv (stride 2) + BN
        xs = x[:, ::stride, ::stride, :].reshape(B * Ho * Wo, Cin)
        sc = fused_matmul(xs, unit['shortcut']['w'],
                          unit['shortcut']['bn_scale'], unit['shortcut']['bn_shift'])
    out = fused_matmul(a2, unit['w2_mat'], s2, t2, residual=sc)
    return out.reshape(B, Ho, Wo, depth)


def output_layer_forward(x, p):
    # BN2d folded into FC weights; Linear bias + BN1d fused into the FC epilogue.
    # TODO(synk): Dropout is identity (eval mode); train-mode BatchNorm (batch stats) not implemented.
    B = x.shape[0]
    x_flat = jnp.transpose(x, (0, 3, 1, 2)).reshape(B, -1).astype(jnp.bfloat16)
    y = fused_matmul(x_flat, p['w_eff'], p['head_scale'], p['head_shift'],
                     out_dtype=jnp.float32)
    return pallas_l2norm(y)


# One jit per unique layer signature -> each distinct shape compiles exactly once.
_input_fwd = jax.jit(input_layer_forward)
_unit_fwd = jax.jit(bottleneck_ir_forward, static_argnames=("stride", "use_direct"))
_head_fwd = jax.jit(output_layer_forward)


def backbone_forward(prep, x_nchw):
    use_direct = _direct_conv_ok()
    x = jnp.transpose(x_nchw.astype(jnp.float32), (0, 2, 3, 1)).astype(jnp.bfloat16)
    x = _input_fwd(x, prep['input'])
    for pu, stride in prep['body']:
        x = _unit_fwd(x, pu, stride=stride, use_direct=use_direct)
    return _head_fwd(x, prep['output'])


# ---------------------------- model definition / init ----------------------------

def get_blocks_cfg(num_layers):
    def blk(in_c, d, n, stride=2):
        return [(in_c, d, stride)] + [(d, d, 1) for _ in range(n - 1)]
    if num_layers == 50:
        return [blk(64, 64, 3), blk(64, 128, 4), blk(128, 256, 14), blk(256, 512, 3)]
    if num_layers == 100:
        return [blk(64, 64, 3), blk(64, 128, 13), blk(128, 256, 30), blk(256, 512, 3)]
    if num_layers == 152:
        return [blk(64, 64, 3), blk(64, 128, 8), blk(128, 256, 36), blk(256, 512, 3)]
    raise ValueError(num_layers)


def init_backbone_params(key, input_size=112, num_layers=50):
    assert input_size in (112, 224)
    counter = [0]

    def nk():
        counter[0] += 1
        return jax.random.fold_in(key, counter[0])

    def conv_w(cin, cout, k):
        fan_in = cin * k * k
        return (jax.random.normal(nk(), (k, k, cin, cout), jnp.float32)
                * jnp.sqrt(2.0 / fan_in))

    def bn_p(c):
        return {'gamma': 1.0 + 0.1 * jax.random.normal(nk(), (c,), jnp.float32),
                'beta': 0.1 * jax.random.normal(nk(), (c,), jnp.float32),
                'mean': 0.1 * jax.random.normal(nk(), (c,), jnp.float32),
                'var': jnp.abs(1.0 + 0.1 * jax.random.normal(nk(), (c,), jnp.float32))}

    def prelu_p(c):
        return jnp.full((c,), 0.25, jnp.float32)

    params = {'input': {'conv': conv_w(3, 64, 3), 'bn': bn_p(64), 'prelu': prelu_p(64)}}
    body = []
    for block in get_blocks_cfg(num_layers):
        for (in_c, depth, stride) in block:
            unit = {'in_channel': in_c, 'depth': depth, 'stride': stride}
            if in_c == depth:
                unit['shortcut'] = None
            else:
                unit['shortcut'] = {'conv': conv_w(in_c, depth, 1), 'bn': bn_p(depth)}
            unit['res'] = {'bn1': bn_p(in_c), 'conv1': conv_w(in_c, depth, 3),
                           'prelu': prelu_p(depth), 'conv2': conv_w(depth, depth, 3),
                           'bn2': bn_p(depth)}
            body.append(unit)
    params['body'] = body

    feat = 7 if input_size == 112 else 14
    fan_in = 512 * feat * feat
    params['output'] = {
        'bn2d': bn_p(512),
        'linear_w': jax.random.normal(nk(), (fan_in, 512), jnp.float32)
                    * jnp.sqrt(1.0 / fan_in),              # stored as W.T
        'linear_b': 0.01 * jax.random.normal(nk(), (512,), jnp.float32),
        'bn1d': bn_p(512),
    }
    return params


def prepare_params(params):
    """One-time kernel-ready param prep: bf16 weights, reshaped taps, folded BNs."""
    prep = {}
    ip = params['input']
    s, t = bn_scale_shift(ip['bn'])
    prep['input'] = {'w27': ip['conv'].reshape(27, 64).astype(jnp.bfloat16),
                     'bn_scale': s, 'bn_shift': t, 'prelu': ip['prelu']}

    body = []
    for unit in params['body']:
        in_c, depth, stride = unit['in_channel'], unit['depth'], unit['stride']
        r = unit['res']
        b1s, b1t = bn_scale_shift(r['bn1'])
        b2s, b2t = bn_scale_shift(r['bn2'])
        pu = {'bn1_scale': b1s, 'bn1_shift': b1t,
              'w1': r['conv1'].reshape(9, in_c, depth).astype(jnp.bfloat16),
              'prelu': r['prelu'],
              'bn2_scale': b2s, 'bn2_shift': b2t,
              'shortcut': None}
        if stride == 1:
            pu['w2'] = r['conv2'].reshape(9, depth, depth).astype(jnp.bfloat16)
        else:
            pu['w2_mat'] = r['conv2'].reshape(9 * depth, depth).astype(jnp.bfloat16)
            if unit['shortcut'] is not None:
                ss, st = bn_scale_shift(unit['shortcut']['bn'])
                pu['shortcut'] = {
                    'w': unit['shortcut']['conv'].reshape(in_c, depth).astype(jnp.bfloat16),
                    'bn_scale': ss, 'bn_shift': st}
        body.append((pu, stride))
    prep['body'] = body

    op = params['output']
    s2d, t2d = bn_scale_shift(op['bn2d'])
    w = op['linear_w']                                     # (feat*feat*512, 512), NCHW-flatten order
    feat2 = w.shape[0] // s2d.shape[0]
    scale_in = jnp.repeat(s2d, feat2)
    shift_in = jnp.repeat(t2d, feat2)
    w_eff = (w * scale_in[:, None]).astype(jnp.bfloat16)   # BN2d folded into FC weight
    b_eff = shift_in @ w + op['linear_b']
    s1d, t1d = bn_scale_shift(op['bn1d'])
    prep['output'] = {'w_eff': w_eff,
                      'head_scale': s1d,
                      'head_shift': b_eff * s1d + t1d}     # bias + BN1d in the epilogue
    return prep


# ---------------------------------- main -----------------------------------

if __name__ == "__main__":
    key = jax.random.PRNGKey(0)
    params = init_backbone_params(jax.random.fold_in(key, 1),
                                  input_size=112, num_layers=50)
    prep = prepare_params(params)
    x = jax.random.normal(jax.random.fold_in(key, 2), (1, 3, 112, 112), jnp.float32)

    out = backbone_forward(prep, x)
    out = jax.block_until_ready(out)

    assert out.shape == (1, 512), out.shape
    assert bool(jnp.all(jnp.isfinite(out)))
    norms = jnp.linalg.norm(out, axis=1)
    assert bool(jnp.all(jnp.abs(norms - 1.0) < 1e-4)), norms
    print("KERNEL_OK")
</pallas_src>

<mosaic_0001>
module attributes {stable_mosaic.version = 11 : i64} {
  func.func @_conv3x3_kernel(%arg0: i32, %arg1: i32, %arg2: memref<1x304x8xbf16, #tpu.memory_space<vmem>>, %arg3: memref<9x8x8xbf16, #tpu.memory_space<vmem>>, %arg4: memref<1x8xf32, #tpu.memory_space<vmem>>, %arg5: memref<1x8xf32, #tpu.memory_space<vmem>>, %arg6: memref<1x8xf32, #tpu.memory_space<vmem>>, %arg7: memref<1x64x8xf32, #tpu.memory_space<vmem>>) attributes {dimension_semantics = [#tpu.dimension_semantics<parallel>, #tpu.dimension_semantics<parallel>], iteration_bounds = array<i64: 1, 4>, scalar_prefetch = 0 : i64, scratch_operands = 0 : i64, tpu.core_type = #tpu.core_type<tc>, window_params = [{transform_indices = @transform_0, window_bounds = array<i64: 1, 304, 8>}, {pipeline_mode = #tpu.pipeline_mode<synchronous>, transform_indices = @transform_1, window_bounds = array<i64: 9, 8, 8>}, {pipeline_mode = #tpu.pipeline_mode<synchronous>, transform_indices = @transform_2, window_bounds = array<i64: 1, 8>}, {pipeline_mode = #tpu.pipeline_mode<synchronous>, transform_indices = @transform_3, window_bounds = array<i64: 1, 8>}, {pipeline_mode = #tpu.pipeline_mode<synchronous>, transform_indices = @transform_4, window_bounds = array<i64: 1, 8>}, {transform_indices = @transform_5, window_bounds = array<i64: 1, 64, 8>}]} {
    %c64_i32 = arith.constant 64 : i32
    %0 = arith.muli %arg1, %c64_i32 : i32
    %1 = tpu.assume_multiple %0, 8 : i32
    %c0 = arith.constant 0 : index
    %2 = arith.index_cast %1 : i32 to index
    %c0_0 = arith.constant 0 : index
    %3 = vector.load %arg2[%c0, %2, %c0_0] : memref<1x304x8xbf16, #tpu.memory_space<vmem>>, vector<1x98x8xbf16>
    %4 = vector.shape_cast %3 : vector<1x98x8xbf16> to vector<98x8xbf16>
    %cst = arith.constant 0.000000e+00 : f32
    %5 = vector.broadcast %cst : f32 to vector<64x8xf32>
    %6 = vector.extract_strided_slice %4 {offsets = [0, 0], sizes = [64, 8], strides = [1, 1]} : vector<98x8xbf16> to vector<64x8xbf16>
    %c0_1 = arith.constant 0 : index
    %c0_2 = arith.constant 0 : index
    %c0_3 = arith.constant 0 : index
    %7 = vector.load %arg3[%c0_1, %c0_2, %c0_3] : memref<9x8x8xbf16, #tpu.memory_space<vmem>>, vector<1x8x8xbf16>
    %8 = vector.shape_cast %7 : vector<1x8x8xbf16> to vector<8x8xbf16>
    %cst_4 = arith.constant dense<0.000000e+00> : vector<64x8xf32>
    %9 = tpu.matmul %6, %8, %cst_4 {dimension_numbers = #tpu.dot_dimension_numbers<[1], [0], [0], [1], [0, 0, 1, 1], [], []>} : vector<64x8xbf16>, vector<8x8xbf16>, vector<64x8xf32> -> vector<64x8xf32>
    %10 = arith.addf %5, %9 : vector<64x8xf32>
    %11 = vector.extract_strided_slice %4 {offsets = [1, 0], sizes = [64, 8], strides = [1, 1]} : vector<98x8xbf16> to vector<64x8xbf16>
    %c1 = arith.constant 1 : index
    %c0_5 = arith.constant 0 : index
    %c0_6 = arith.constant 0 : index
    %12 = vector.load %arg3[%c1, %c0_5, %c0_6] : memref<9x8x8xbf16, #tpu.memory_space<vmem>>, vector<1x8x8xbf16>
    %13 = vector.shape_cast %12 : vector<1x8x8xbf16> to vector<8x8xbf16>
    %cst_7 = arith.constant dense<0.000000e+00> : vector<64x8xf32>
    %14 = tpu.matmul %11, %13, %cst_7 {dimension_numbers = #tpu.dot_dimension_numbers<[1], [0], [0], [1], [0, 0, 1, 1], [], []>} : vector<64x8xbf16>, vector<8x8xbf16>, vector<64x8xf32> -> vector<64x8xf32>
    %15 = arith.addf %10, %14 : vector<64x8xf32>
    %16 = vector.extract_strided_slice %4 {offsets = [2, 0], sizes = [64, 8], strides = [1, 1]} : vector<98x8xbf16> to vector<64x8xbf16>
    %c2 = arith.constant 2 : index
    %c0_8 = arith.constant 0 : index
    %c0_9 = arith.constant 0 : index
    %17 = vector.load %arg3[%c2, %c0_8, %c0_9] : memref<9x8x8xbf16, #tpu.memory_space<vmem>>, vector<1x8x8xbf16>
    %18 = vector.shape_cast %17 : vector<1x8x8xbf16> to vector<8x8xbf16>
    %cst_10 = arith.constant dense<0.000000e+00> : vector<64x8xf32>
    %19 = tpu.matmul %16, %18, %cst_10 {dimension_numbers = #tpu.dot_dimension_numbers<[1], [0], [0], [1], [0, 0, 1, 1], [], []>} : vector<64x8xbf16>, vector<8x8xbf16>, vector<64x8xf32> -> vector<64x8xf32>
    %20 = arith.addf %15, %19 : vector<64x8xf32>
    %21 = vector.extract_strided_slice %4 {offsets = [16, 0], sizes = [64, 8], strides = [1, 1]} : vector<98x8xbf16> to vector<64x8xbf16>
    %c3 = arith.constant 3 : index
    %c0_11 = arith.constant 0 : index
    %c0_12 = arith.constant 0 : index
    %22 = vector.load %arg3[%c3, %c0_11, %c0_12] : memref<9x8x8xbf16, #tpu.memory_space<vmem>>, vector<1x8x8xbf16>
    %23 = vector.shape_cast %22 : vector<1x8x8xbf16> to vector<8x8xbf16>
    %cst_13 = arith.constant dense<0.000000e+00> : vector<64x8xf32>
    %24 = tpu.matmul %21, %23, %cst_13 {dimension_numbers = #tpu.dot_dimension_numbers<[1], [0], [0], [1], [0, 0, 1, 1], [], []>} : vector<64x8xbf16>, vector<8x8xbf16>, vector<64x8xf32> -> vector<64x8xf32>
    %25 = arith.addf %20, %24 : vector<64x8xf32>
    %26 = vector.extract_strided_slice %4 {offsets = [17, 0], sizes = [64, 8], strides = [1, 1]} : vector<98x8xbf16> to vector<64x8xbf16>
    %c4 = arith.constant 4 : index
    %c0_14 = arith.constant 0 : index
    %c0_15 = arith.constant 0 : index
    %27 = vector.load %arg3[%c4, %c0_14, %c0_15] : memref<9x8x8xbf16, #tpu.memory_space<vmem>>, vector<1x8x8xbf16>
    %28 = vector.shape_cast %27 : vector<1x8x8xbf16> to vector<8x8xbf16>
    %cst_16 = arith.constant dense<0.000000e+00> : vector<64x8xf32>
    %29 = tpu.matmul %26, %28, %cst_16 {dimension_numbers = #tpu.dot_dimension_numbers<[1], [0], [0], [1], [0, 0, 1, 1], [], []>} : vector<64x8xbf16>, vector<8x8xbf16>, vector<64x8xf32> -> vector<64x8xf32>
    %30 = arith.addf %25, %29 : vector<64x8xf32>
    %31 = vector.extract_strided_slice %4 {offsets = [18, 0], sizes = [64, 8], strides = [1, 1]} : vector<98x8xbf16> to vector<64x8xbf16>
    %c5 = arith.constant 5 : index
    %c0_17 = arith.constant 0 : index
    %c0_18 = arith.constant 0 : index
    %32 = vector.load %arg3[%c5, %c0_17, %c0_18] : memref<9x8x8xbf16, #tpu.memory_space<vmem>>, vector<1x8x8xbf16>
    %33 = vector.shape_cast %32 : vector<1x8x8xbf16> to vector<8x8xbf16>
    %cst_19 = arith.constant dense<0.000000e+00> : vector<64x8xf32>
    %34 = tpu.matmul %31, %33, %cst_19 {dimension_numbers = #tpu.dot_dimension_numbers<[1], [0], [0], [1], [0, 0, 1, 1], [], []>} : vector<64x8xbf16>, vector<8x8xbf16>, vector<64x8xf32> -> vector<64x8xf32>
    %35 = arith.addf %30, %34 : vector<64x8xf32>
    %36 = vector.extract_strided_slice %4 {offsets = [32, 0], sizes = [64, 8], strides = [1, 1]} : vector<98x8xbf16> to vector<64x8xbf16>
    %c6 = arith.constant 6 : index
    %c0_20 = arith.constant 0 : index
    %c0_21 = arith.constant 0 : index
    %37 = vector.load %arg3[%c6, %c0_20, %c0_21] : memref<9x8x8xbf16, #tpu.memory_space<vmem>>, vector<1x8x8xbf16>
    %38 = vector.shape_cast %37 : vector<1x8x8xbf16> to vector<8x8xbf16>
    %cst_22 = arith.constant dense<0.000000e+00> : vector<64x8xf32>
    %39 = tpu.matmul %36, %38, %cst_22 {dimension_numbers = #tpu.dot_dimension_numbers<[1], [0], [0], [1], [0, 0, 1, 1], [], []>} : vector<64x8xbf16>, vector<8x8xbf16>, vector<64x8xf32> -> vector<64x8xf32>
    %40 = arith.addf %35, %39 : vector<64x8xf32>
    %41 = vector.extract_strided_slice %4 {offsets = [33, 0], sizes = [64, 8], strides = [1, 1]} : vector<98x8xbf16> to vector<64x8xbf16>
    %c7 = arith.constant 7 : index
    %c0_23 = arith.constant 0 : index
    %c0_24 = arith.constant 0 : index
    %42 = vector.load %arg3[%c7, %c0_23, %c0_24] : memref<9x8x8xbf16, #tpu.memory_space<vmem>>, vector<1x8x8xbf16>
    %43 = vector.shape_cast %42 : vector<1x8x8xbf16> to vector<8x8xbf16>
    %cst_25 = arith.constant dense<0.000000e+00> : vector<64x8xf32>
    %44 = tpu.matmul %41, %43, %cst_25 {dimension_numbers = #tpu.dot_dimension_numbers<[1], [0], [0], [1], [0, 0, 1, 1], [], []>} : vector<64x8xbf16>, vector<8x8xbf16>, vector<64x8xf32> -> vector<64x8xf32>
    %45 = arith.addf %40, %44 : vector<64x8xf32>
    %46 = vector.extract_strided_slice %4 {offsets = [34, 0], sizes = [64, 8], strides = [1, 1]} : vector<98x8xbf16> to vector<64x8xbf16>
    %c8 = arith.constant 8 : index
    %c0_26 = arith.constant 0 : index
    %c0_27 = arith.constant 0 : index
    %47 = vector.load %arg3[%c8, %c0_26, %c0_27] : memref<9x8x8xbf16, #tpu.memory_space<vmem>>, vector<1x8x8xbf16>
    %48 = vector.shape_cast %47 : vector<1x8x8xbf16> to vector<8x8xbf16>
    %cst_28 = arith.constant dense<0.000000e+00> : vector<64x8xf32>
    %49 = tpu.matmul %46, %48, %cst_28 {dimension_numbers = #tpu.dot_dimension_numbers<[1], [0], [0], [1], [0, 0, 1, 1], [], []>} : vector<64x8xbf16>, vector<8x8xbf16>, vector<64x8xf32> -> vector<64x8xf32>
    %50 = arith.addf %45, %49 : vector<64x8xf32>
    %c0_29 = arith.constant 0 : index
    %c0_30 = arith.constant 0 : index
    %c0_31 = arith.constant 0 : index
    %51 = vector.load %arg7[%c0_29, %c0_30, %c0_31] : memref<1x64x8xf32, #tpu.memory_space<vmem>>, vector<1x64x8xf32>
    %52 = vector.shape_cast %51 : vector<1x64x8xf32> to vector<64x8xf32>
    %53 = vector.shape_cast %50 : vector<64x8xf32> to vector<1x64x8xf32>
    tpu.vector_store %arg7[%c0_29, %c0_30, %c0_31], %53 {strides = array<i32>} : memref<1x64x8xf32, #tpu.memory_space<vmem>>, vector<1x64x8xf32>,
    return
  }
  func.func @transform_0(%arg0: i32, %arg1: i32) -> (i32, i32, i32) {
    %c0_i32 = arith.constant 0 : i32
    %c0_i32_0 = arith.constant 0 : i32
    %c0_i32_1 = arith.constant 0 : i32
    return %arg0, %c0_i32, %c0_i32_0 : i32, i32, i32
  }
  func.func @transform_1(%arg0: i32, %arg1: i32) -> (i32, i32, i32) {
    %c0_i32 = arith.constant 0 : i32
    %c0_i32_0 = arith.constant 0 : i32
    %c0_i32_1 = arith.constant 0 : i32
    %c0_i32_2 = arith.constant 0 : i32
    return %c0_i32, %c0_i32_0, %c0_i32_1 : i32, i32, i32
  }
  func.func @transform_2(%arg0: i32, %arg1: i32) -> (i32, i32) {
    %c0_i32 = arith.constant 0 : i32
    %c0_i32_0 = arith.constant 0 : i32
    %c0_i32_1 = arith.constant 0 : i32
    return %c0_i32, %c0_i32_0 : i32, i32
  }
  func.func @transform_3(%arg0: i32, %arg1: i32) -> (i32, i32) {
    %c0_i32 = arith.constant 0 : i32
    %c0_i32_0 = arith.constant 0 : i32
    %c0_i32_1 = arith.constant 0 : i32
    return %c0_i32, %c0_i32_0 : i32, i32
  }
  func.func @transform_4(%arg0: i32, %arg1: i32) -> (i32, i32) {
    %c0_i32 = arith.constant 0 : i32
    %c0_i32_0 = arith.constant 0 : i32
    %c0_i32_1 = arith.constant 0 : i32
    return %c0_i32, %c0_i32_0 : i32, i32
  }
  func.func @transform_5(%arg0: i32, %arg1: i32) -> (i32, i32, i32) {
    %c0_i32 = arith.constant 0 : i32
    %c0_i32_0 = arith.constant 0 : i32
    return %arg0, %arg1, %c0_i32 : i32, i32, i32
  }
}

module attributes {stable_mosaic.version = 11 : i64} {
  func.func @_fused_mm_kernel(%arg0: i32, %arg1: i32, %arg2: memref<448x27xbf16, #tpu.memory_space<vmem>>, %arg3: memref<27x64xbf16, #tpu.memory_space<vmem>>, %arg4: memref<1x64xf32, #tpu.memory_space<vmem>>, %arg5: memref<1x64xf32, #tpu.memory_space<vmem>>, %arg6: memref<1x64xf32, #tpu.memory_space<vmem>>, %arg7: memref<448x64xbf16, #tpu.memory_space<vmem>>, %arg8: memref<448x64xf32, #tpu.memory_space<vmem>>) attributes {dimension_semantics = [#tpu.dimension_semantics<parallel>, #tpu.dimension_semantics<arbitrary>], iteration_bounds = array<i64: 28, 1>, scalar_prefetch = 0 : i64, scratch_operands = 1 : i64, tpu.core_type = #tpu.core_type<tc>, window_params = [{transform_indices = @transform_0, window_bounds = array<i64: 448, 27>}, {transform_indices = @transform_1, window_bounds = array<i64: 27, 64>}, {pipeline_mode = #tpu.pipeline_mode<synchronous>, transform_indices = @transform_2, window_bounds = array<i64: 1, 64>}, {pipeline_mode = #tpu.pipeline_mode<synchronous>, transform_indices = @transform_3, window_bounds = array<i64: 1, 64>}, {pipeline_mode = #tpu.pipeline_mode<synchronous>, transform_indices = @transform_4, window_bounds = array<i64: 1, 64>}, {transform_indices = @transform_5, window_bounds = array<i64: 448, 64>}]} {
    %c0_i32 = arith.constant 0 : i32
    %0 = arith.cmpi eq, %arg1, %c0_i32 : i32
    %1 = arith.extui %0 : i1 to i32
    %c0_i32_0 = arith.constant 0 : i32
    %2 = arith.cmpi ne, %1, %c0_i32_0 : i32
    scf.if %2 {
      %cst_10 = arith.constant 0.000000e+00 : f32
      %12 = vector.broadcast %cst_10 : f32 to vector<448x64xf32>
      %c0_11 = arith.constant 0 : index
      %c0_12 = arith.constant 0 : index
      %13 = vector.load %arg8[%c0_11, %c0_12] : memref<448x64xf32, #tpu.memory_space<vmem>>, vector<448x64xf32>
      tpu.vector_store %arg8[%c0_11, %c0_12], %12 {strides = array<i32>} : memref<448x64xf32, #tpu.memory_space<vmem>>, vector<448x64xf32>,
    } else {
    }
    %c0 = arith.constant 0 : index
    %c0_1 = arith.constant 0 : index
    %3 = vector.load %arg8[%c0, %c0_1] : memref<448x64xf32, #tpu.memory_space<vmem>>, vector<448x64xf32>
    %c0_2 = arith.constant 0 : index
    %c0_3 = arith.constant 0 : index
    %4 = vector.load %arg2[%c0_2, %c0_3] : memref<448x27xbf16, #tpu.memory_space<vmem>>, vector<448x27xbf16>
    %c0_4 = arith.constant 0 : index
    %c0_5 = arith.constant 0 : index
    %5 = vector.load %arg3[%c0_4, %c0_5] : memref<27x64xbf16, #tpu.memory_space<vmem>>, vector<27x64xbf16>
    %cst = arith.constant dense<0.000000e+00> : vector<448x64xf32>
    %6 = tpu.matmul %4, %5, %cst {dimension_numbers = #tpu.dot_dimension_numbers<[1], [0], [0], [1], [0, 0, 1, 1], [], []>} : vector<448x27xbf16>, vector<27x64xbf16>, vector<448x64xf32> -> vector<448x64xf32>
    %7 = arith.addf %3, %6 : vector<448x64xf32>
    %c0_6 = arith.constant 0 : index
    %c0_7 = arith.constant 0 : index
    %8 = vector.load %arg8[%c0_6, %c0_7] : memref<448x64xf32, #tpu.memory_space<vmem>>, vector<448x64xf32>
    tpu.vector_store %arg8[%c0_6, %c0_7], %7 {strides = array<i32>} : memref<448x64xf32, #tpu.memory_space<vmem>>, vector<448x64xf32>,
    %c0_i32_8 = arith.constant 0 : i32
    %9 = arith.cmpi eq, %arg1, %c0_i32_8 : i32
    %10 = arith.extui %9 : i1 to i32
    %c0_i32_9 = arith.constant 0 : i32
    %11 = arith.cmpi ne, %10, %c0_i32_9 : i32
    scf.if %11 {
      %c0_10 = arith.constant 0 : index
      %c0_11 = arith.constant 0 : index
      %12 = vector.load %arg8[%c0_10, %c0_11] : memref<448x64xf32, #tpu.memory_space<vmem>>, vector<448x64xf32>
      %c0_12 = arith.constant 0 : index
      %c0_13 = arith.constant 0 : index
      %13 = vector.load %arg4[%c0_12, %c0_13] : memref<1x64xf32, #tpu.memory_space<vmem>>, vector<1x64xf32>
      %14 = vector.broadcast %13 : vector<1x64xf32> to vector<448x64xf32>
      %15 = arith.mulf %12, %14 : vector<448x64xf32>
      %c0_14 = arith.constant 0 : index
      %c0_15 = arith.constant 0 : index
      %16 = vector.load %arg5[%c0_14, %c0_15] : memref<1x64xf32, #tpu.memory_space<vmem>>, vector<1x64xf32>
      %17 = vector.broadcast %16 : vector<1x64xf32> to vector<448x64xf32>
      %18 = arith.addf %15, %17 : vector<448x64xf32>
      %cst_16 = arith.constant 0.000000e+00 : f32
      %19 = vector.broadcast %cst_16 : f32 to vector<448x64xf32>
      %20 = arith.cmpf oge, %18, %19 : vector<448x64xf32>
      %c0_17 = arith.constant 0 : index
      %c0_18 = arith.constant 0 : index
      %21 = vector.load %arg6[%c0_17, %c0_18] : memref<1x64xf32, #tpu.memory_space<vmem>>, vector<1x64xf32>
      %22 = vector.broadcast %21 : vector<1x64xf32> to vector<448x64xf32>
      %23 = arith.mulf %22, %18 : vector<448x64xf32>
      %24 = arith.select %20, %18, %23 : vector<448x64xi1>, vector<448x64xf32>
      %25 = arith.truncf %24 : vector<448x64xf32> to vector<448x64xbf16>
      %c0_19 = arith.constant 0 : index
      %c0_20 = arith.constant 0 : index
      %26 = vector.load %arg7[%c0_19, %c0_20] : memref<448x64xbf16, #tpu.memory_space<vmem>>, vector<448x64xbf16>
      tpu.vector_store %arg7[%c0_19, %c0_20], %25 {strides = array<i32>} : memref<448x64xbf16, #tpu.memory_space<vmem>>, vector<448x64xbf16>,
    } else {
    }
    return
  }
  func.func @transform_0(%arg0: i32, %arg1: i32) -> (i32, i32) {
    %c0_i32 = arith.constant 0 : i32
    return %arg0, %arg1 : i32, i32
  }
  func.func @transform_1(%arg0: i32, %arg1: i32) -> (i32, i32) {
    %c0_i32 = arith.constant 0 : i32
    %c0_i32_0 = arith.constant 0 : i32
    return %arg1, %c0_i32 : i32, i32
  }
  func.func @transform_2(%arg0: i32, %arg1: i32) -> (i32, i32) {
    %c0_i32 = arith.constant 0 : i32
    %c0_i32_0 = arith.constant 0 : i32
    %c0_i32_1 = arith.constant 0 : i32
    return %c0_i32, %c0_i32_0 : i32, i32
  }
  func.func @transform_3(%arg0: i32, %arg1: i32) -> (i32, i32) {
    %c0_i32 = arith.constant 0 : i32
    %c0_i32_0 = arith.constant 0 : i32
    %c0_i32_1 = arith.constant 0 : i32
    return %c0_i32, %c0_i32_0 : i32, i32
  }
  func.func @transform_4(%arg0: i32, %arg1: i32) -> (i32, i32) {
    %c0_i32 = arith.constant 0 : i32
    %c0_i32_0 = arith.constant 0 : i32
    %c0_i32_1 = arith.constant 0 : i32
    return %c0_i32, %c0_i32_0 : i32, i32
  }
  func.func @transform_5(%arg0: i32, %arg1: i32) -> (i32, i32) {
    %c0_i32 = arith.constant 0 : i32
    %c0_i32_0 = arith.constant 0 : i32
    return %arg0, %c0_i32 : i32, i32
  }
}

</mosaic_0001>

<bundles_post_ra>
// kernel: tpu_custom_call.1
= control target key start
LH: loop header
LB: loop body
LE: loop exit
PB: predicated region body
PF: predicated region fallthrough
CT: control target
= control target key end

     0   :  { %s1586_s18 = smov 0   ;;  %s1588_s19 = smov 0   ;;  %s1812_s0 = inlined_call_operand.vmem [shape: bf16[1,304,8], index: 0, kind: input, shape index: {}]   ;;  %s1813_s1 = inlined_call_operand.vmem [shape: bf16[9,8,8], index: 1, kind: input, shape index: {}]   ;;  %s1814_s2 = inlined_call_operand.vmem [shape: f32[1,8], index: 2, kind: input, shape index: {}]   ;;  %s1815_s3 = inlined_call_operand.vmem [shape: f32[1,8], index: 3, kind: input, shape index: {}]   ;;  %s1816_s4 = inlined_call_operand.vmem [shape: f32[1,8], index: 4, kind: input, shape index: {}]   ;;  %s1817_s5 = inlined_call_operand.vmem [shape: f32[1,256,8], index: 5, kind: output, shape index: {}]  }
   0x1   :  { %s1590_s20 = smov 0  }
   0x2 LB: > { %s24_s2 = sadd.s32 1, %s1550_s19  ;;  %p1228_p0 = scmp.ge.s32.totalorder %s1554_s20, 1  ;;  %s1554_s20 = sphi %s1590_s20, %s15_s20   ;;  %s1550_s19 = sphi %s1588_s19, %s1819_s19   ;;  %s1546_s18 = sphi %s1586_s18, %s1818_s18  }
   0x3   : > { %p25_p1 = scmp.ge.s32.totalorder %s24_s2, 4  ;;  %p201_p2 = scmp.lt.s32.totalorder %s1554_s20, 5 }
   0x5   : > { %s1821_s2 = smov (%p25_p1, %s24_s2), 0  ;;  %p202_p3 = pnand %p1228_p0, %p201_p2 }
   0x6   : > { %v1233_v0 = vld [vmem:[%s1813_s1 + $0x4] sm:$0xf] (!%p202_p3)  ;;  %vm343_vm0 = vcmask (!%p202_p3), 1043456   ;;  %v1612_v1 = vld [vmem:[%s1813_s1 + $0x10] sm:$0xf] (!%p202_p3)  ;;  %s1231_s23 = sshll.u32 (!%p202_p3), %s1546_s18, 6 }
   0x7   : > { %205 = sbr.rel (%p202_p3) target bundleno = 305 (0x131), region = 40  ;;  %1489 = vmatprep.subr.msk.bf16.mxu1 (!%p202_p3), %vm343_vm0, %v1233_v0  ;;  %1493 = vmatprep.subr.msk.bf16.mxu0 (!%p202_p3), %vm343_vm0, %v1612_v1  ;;  %v345_v2 = vsel (!%p202_p3), %vm343_vm0, %v1233_v0, 0  ;;  %v1621_v3 = vsel (!%p202_p3), %vm343_vm0, %v1612_v1, 0  ;;  %s250_s24 = sshra.s32 (!%p202_p3), %s1231_s23, 3  ;;  %v267_v4 = vld [vmem:[%s1813_s1] sm:$0xf] (!%p202_p3) }
   0x8   : > { %1334 = vmatpush3.bf16.msra.mxu1 (!%p202_p3), %v345_v2  ;;  %1374 = vmatpush3.bf16.msra.mxu0 (!%p202_p3), %v1621_v3  ;;  %s1232_s25 = sshll.u32 (!%p202_p3), %s250_s24, 2  ;;  %v1264_v5 = vld [vmem:[%s1813_s1 + $0x14] sm:$0xf] (!%p202_p3)  ;;  %vm293_vm1 = vsmask.f32 (!%p202_p3), 7424  ;;  %vm330_vm2 = vcmask (!%p202_p3), 64512  }
   0x9   : > { %s1633_s7 = scalar_lea.vmem (!%p202_p3), %s1812_s0, %s1232_s25  ;;  %1490 = vmatprep.subr.msk.bf16.mxu1 (!%p202_p3), %vm343_vm0, %v267_v4  ;;  %1495 = vmatprep.subr.msk.bf16.mxu0 (!%p202_p3), %vm343_vm0, %v1264_v5  ;;  %vm490_vm3 = vcmask (!%p202_p3), 1046528   ;;  %v421_v32 = vsel (!%p202_p3), %vm343_vm0, %v267_v4, 0  ;;  %v784_v33 = vsel (!%p202_p3), %vm343_vm0, %v1264_v5, 0  ;;  %v1269_v37 = vld [vmem:[%s1813_s1 + $0x18] sm:$0xf] (!%p202_p3)  ;;  %s1229_s3 = sshll.u32 (!%p202_p3), %s1546_s18, 3 }
   0xa   : > { %v1638_v6 = vld [vmem:[%s1633_s7] sm:$0xff] (!%p202_p3)   ;;  %v1641_v7 = vld [vmem:[%s1633_s7 + $0x8] sm:$0xff] (!%p202_p3)   ;;  %v1644_v8 = vld [vmem:[%s1633_s7 + $0x10] sm:$0xff] (!%p202_p3)   ;;  %v868_v48 = vsel (!%p202_p3), %vm343_vm0, %v1269_v37, 0  ;;  %p241_p4 = scmp.lt.s32.totalorder (!%p202_p3), %s1229_s3, 31 }
   0xb   : > { %v295_v9 = vshrl.u32 (!%p202_p3), %v1638_v6, 16  ;;  %v297_v10 = vshll.u32 (!%p202_p3), %v1638_v6, 16  ;;  %v302_v11 = vshll.u32 (!%p202_p3), %v1641_v7, 16  ;;  %v306_v12 = vshrl.u32 (!%p202_p3), %v1641_v7, 16  ;;  %v1653_v15 = vld [vmem:[%s1633_s7 + $0x18] sm:$0xff] (!%p202_p3)  }
   0xc   : > { %v310_v13 = vshll.u32 (!%p202_p3), %v1644_v8, 16  ;;  %v314_v14 = vshrl.u32 (!%p202_p3), %v1644_v8, 16  ;;  %v262_v18 = vld [vmem:[%s1633_s7 + $0x20] sm:$0xf] (!%p202_p3)  ;;  %v318_v20 = vshll.u32 (!%p202_p3), %v1653_v15, 16  ;;  %v492_v22 = vrot.slane (!%p202_p3), %v1641_v7, 1 }
   0xd   : > { %v299_v16 = vrot.slane (!%p202_p3), %v297_v10, 1  ;;  %v304_v17 = vrot.slane (!%p202_p3), %v302_v11, 1  ;;  %v1657_v21 = vcombine.low (!%p202_p3), %v262_v18, %v262_v18  ;;  %v494_v25 = vrot.slane (!%p202_p3), %v1644_v8, 1  ;;  %v263_v35 = vld [vmem:[%s1633_s7 + $0x24] sm:$0xf] (!%p202_p3) }
   0xe   : > { %v312_v19 = vrot.slane %v310_v13, 1  ;;  %v320_v27 = vrot.slane %v318_v20, 1  ;;  %v322_v28 = vshrl.u32 %v1653_v15, 16  ;;  %v1247_v38 = vld [vmem:[%s1813_s1 + $0x8] sm:$0xf]  ;;  %v1685_v41 = vcombine.low %v262_v18, %v263_v35  ;;  %s1823_s3 = smov (!%p241_p4, %s1229_s3), 31 }
   0xf   : > { %v300_v23 = vor.u32 %v299_v16, %v295_v9  ;;  %v308_v24 = vor.u32 %v306_v12, %v304_v17  ;;  %v326_v29 = vshll.u32 %v1657_v21, 16  ;;  %v495_v36 = vsel %vm490_vm3, %v492_v22, %v494_v25  ;;  %v264_v45 = vld [vmem:[%s1633_s7 + $0x28] sm:$0xf]  ;;  %v1275_v50 = vld [vmem:[%s1813_s1 + $0x1c] sm:$0xf]  ;;  %s1230_s4 = sshll.u32 %s1823_s3, 3 }
  0x10   : > { %v316_v26 = vor.u32 %v314_v14, %v312_v19  ;;  %v324_v39 = vor.u32 %v322_v28, %v320_v27  ;;  %v496_v43 = vrot.slane %v1653_v15, 1  ;;  %v1693_v44 = vrot.slane %v1685_v41, 1  ;;  %v1252_v53 = vld [vmem:[%s1813_s1 + $0xc] sm:$0xf]  ;;  %v1281_v58 = vld [vmem:[%s1813_s1 + $0x20] sm:$0xf]  ;;  %s246_s23 = scalar_lea.vmem %s1817_s5, %s1230_s4 }
  0x11   : > { %v305_v30 = vsel %vm293_vm1, %v300_v23, %v304_v17  ;;  %v313_v31 = vsel %vm293_vm1, %v308_v24, %v312_v19  ;;  %v328_v40 = vrot.slane %v326_v29, 1  ;;  %v1702_v47 = vcombine.low %v264_v45, %v264_v45  ;;  %v265_v59 = vld [vmem:[%s1633_s7 + $0x2c] sm:$0xf] }
  0x12   : > { %1335 = vmatprep.mubr.msk.bf16.mxu1 %vm330_vm2, %v305_v30  ;;  %1375 = vmatprep.mubr.msk.bf16.mxu0 %vm330_vm2, %v313_v31  ;;  %v1670_v34 = vsel %vm293_vm1, %v316_v26, %v320_v27  ;;  %v1698_v46 = vsel %vm490_vm3, %v494_v25, %v496_v43  ;;  %v1707_v49 = vsel %vm490_vm3, %v496_v43, %v1693_v44  ;;  %v513_v52 = vsel %vm343_vm0, %v1247_v38, 0 }
  0x13   : > { %1336 = vmatmul.mubr.msk.bf16.vlgmr.msra.gmra.mrb[0].mxu1 %vm330_vm2, %v313_v31  ;;  %1376 = vmatmul.mubr.msk.bf16.vlgmr.msra.gmra.mrb[0].mxu0 %vm330_vm2, %v1670_v34  ;;  %v329_v42 = vsel %vm293_vm1, %v324_v39, %v328_v40  ;;  %v775_v51 = vrot.slane %v1702_v47, 1  ;;  %v491_v55 = vrot.slane %v1638_v6, 1  ;;  %v967_v57 = vsel %vm343_vm0, %v1275_v50, 0 }
  0x14   : > { %1344 = vmatpush3.bf16.msra.mxu1 %v421_v32  ;;  %1384 = vmatpush3.bf16.msra.mxu0 %v784_v33  ;;  %v597_v60 = vsel %vm343_vm0, %v1252_v53, 0  ;;  %v1270_v61 = vcombine.low %v264_v45, %v265_v59  ;;  %v677_v62 = vshll.u32 %v1685_v41, 16  ;;  %v498_v63 = vrot.slane %v1657_v21, 1 }
  0x15   : > { %1339 = vmatprep.mubr.msk.bf16.mxu1 %vm330_vm2, %v1670_v34  ;;  %1385 = vmatprep.mubr.msk.bf16.mxu0 %vm330_vm2, %v495_v36  ;;  %v776_v54 = vsel %vm490_vm3, %v1693_v44, %v775_v51  ;;  %v493_v56 = vsel %vm490_vm3, %v491_v55, %v492_v22  ;;  %v681_v0 = vshrl.u32 %v1685_v41, 16  ;;  %v1055_v13 = vsel %vm343_vm0, %v1281_v58, 0 }
  0x16   : > { %1496 = vmatprep.subr.msk.bf16.mxu0 %vm343_vm0, %v1269_v37  ;;  %1491 = vmatprep.subr.msk.bf16.mxu1 %vm343_vm0, %v1247_v38  ;;  %v948_v2 = vshll.u32 %v1270_v61, 16  ;;  %v679_v4 = vrot.slane %v677_v62, 1  ;;  %v499_v5 = vsel %vm490_vm3, %v496_v43, %v498_v63  ;;  %v1044_v18 = vrot.slane %v1270_v61, 1 }
  0x17   : > { %v685_v19 = vshll.u32 %v1702_v47, 16 }
  0x18   : > { %v683_v9 = vor.u32 %v681_v0, %v679_v4  ;;  %v950_v10 = vrot.slane %v948_v2, 1  ;;  %v680_v11 = vsel %vm293_vm1, %v324_v39, %v679_v4 }
  0x1a   : > { %v951_v14 = vsel %vm293_vm1, %v683_v9, %v950_v10 }
  0x1b   : > { %1340 = vmatmul.mubr.msk.bf16.gmra.mrb[4].mxu1 %vm330_vm2, %v329_v42 }
  0x1c   : > { %1345 = vmatprep.mubr.msk.bf16.mxu1 %vm330_vm2, %v1638_v6  ;;  %v1531_v6 = vld [vmem:[%s1633_s7 + $0x30] ss:$0 sps:$4 sm:$0x11]  }
  0x1d   : > { %v956_v12 = vshll.u32 %v1531_v6, 16 }
  0x1f   : > { %1386 = vmatmul.mubr.msk.bf16.vlgmr.msra.gmra.mrb[0].mxu0 %vm330_vm2, %v1698_v46  ;;  %v958_v17 = vrot.slane %v956_v12, 1 }
  0x20   : > { %1394 = vmatpush3.bf16.msra.mxu0 %v868_v48  ;;  %1389 = vmatprep.mubr.msk.bf16.mxu0 %vm330_vm2, %v1707_v49 }
  0x21   : > { %1497 = vmatprep.subr.msk.bf16.mxu0 %vm343_vm0, %v1275_v50 }
  0x23   : > { %1346 = vmatmul.mubr.msk.bf16.vlgmr.msra.gmra.mrb[0].mxu1 %vm330_vm2, %v1641_v7 }
  0x24   : > { %1354 = vmatpush3.bf16.msra.mxu1 %v513_v52  ;;  %1349 = vmatprep.mubr.msk.bf16.mxu1 %vm330_vm2, %v1644_v8 }
  0x25   : > { %1492 = vmatprep.subr.msk.bf16.mxu1 %vm343_vm0, %v1252_v53 }
  0x27   : > { %1390 = vmatmul.mubr.msk.bf16.gmra.mrb[4].mxu0 %vm330_vm2, %v776_v54 }
  0x28   : > { %1395 = vmatprep.mubr.msk.bf16.mxu0 %vm330_vm2, %v1644_v8 }
  0x2b   : > { %1350 = vmatmul.mubr.msk.bf16.gmra.mrb[4].mxu1 %vm330_vm2, %v1653_v15 }
  0x2c   : > { %1355 = vmatprep.mubr.msk.bf16.mxu1 %vm330_vm2, %v493_v56 }
  0x2f   : > { %1396 = vmatmul.mubr.msk.bf16.vlgmr.msra.gmra.mrb[0].mxu0 %vm330_vm2, %v1653_v15 }
  0x30   : > { %1404 = vmatpush3.bf16.msra.mxu0 %v967_v57  ;;  %1399 = vmatprep.mubr.msk.bf16.mxu0 %vm330_vm2, %v1685_v41 }
  0x31   : > { %1498 = vmatprep.subr.msk.bf16.mxu0 %vm343_vm0, %v1281_v58 }
  0x33   : > { %1356 = vmatmul.mubr.msk.bf16.vlgmr.msra.gmra.mrb[0].mxu1 %vm330_vm2, %v495_v36 }
  0x34   : > { %1364 = vmatpush3.bf16.msra.mxu1 %v597_v60  ;;  %1359 = vmatprep.mubr.msk.bf16.mxu1 %vm330_vm2, %v1698_v46 }
  0x35   : > { %1494 = vmatprep.subr.msk.bf16.mxu1 %vm343_vm0, %v1612_v1  ;;  %v952_v1 = vshrl.u32 %v1270_v61, 16 }
  0x37   : > { %1400 = vmatmul.mubr.msk.bf16.gmra.mrb[4].mxu0 %vm330_vm2, %v1270_v61  ;;  %v954_v16 = vor.u32 %v952_v1, %v950_v10 }
  0x38   : > { %1405 = vmatprep.mubr.msk.bf16.mxu0 %vm330_vm2, %v1670_v34 }
  0x3b   : > { %1360 = vmatmul.mubr.msk.bf16.gmra.mrb[4].mxu1 %vm330_vm2, %v499_v5 }
  0x3c   : > { %1365 = vmatprep.mubr.msk.bf16.mxu1 %vm330_vm2, %v1641_v7  ;;  %v959_v7 = vsel %vm293_vm1, %v954_v16, %v958_v17 }
  0x3f   : > { %1406 = vmatmul.mubr.msk.bf16.vlgmr.msra.gmra.mrb[0].mxu0 %vm330_vm2, %v680_v11 }
  0x40   : > { %1414 = vmatpush3.bf16.msra.mxu0 %v1055_v13  ;;  %1409 = vmatprep.mubr.msk.bf16.mxu0 %vm330_vm2, %v951_v14 }
  0x43   : > { %1366 = vmatmul.mubr.msk.bf16.vlgmr.msra.gmra.mrb[0].mxu1 %vm330_vm2, %v1644_v8  ;;  %v687_v8 = vrot.slane %v685_v19, 1 }
  0x44   : > { %1424 = vmatpush3.bf16.msra.mxu1 %v1621_v3  ;;  %1369 = vmatprep.mubr.msk.bf16.mxu1 %vm330_vm2, %v1653_v15  ;;  %v1045_v3 = vsel %vm490_vm3, %v1693_v44, %v1044_v18  ;;  %v1046_v15 = vrot.slane %v1531_v6, 1 }
  0x45   : > { %v688_v20 = vsel %vm293_vm1, %v683_v9, %v687_v8 }
  0x46   : > { %v1047_v21 = vsel %vm490_vm3, %v1044_v18, %v1046_v15 }
  0x47   : > { %1410 = vmatmul.mubr.msk.bf16.gmra.mrb[4].mxu0 %vm330_vm2, %v959_v7 }
  0x48   : > { %1415 = vmatprep.mubr.msk.bf16.mxu0 %vm330_vm2, %v1698_v46 }
  0x4b   : > { %1370 = vmatmul.mubr.msk.bf16.gmra.mrb[4].mxu1 %vm330_vm2, %v1685_v41 }
  0x4c   : > { %1379 = vmatprep.mubr.msk.bf16.mxu1 %vm330_vm2, %v680_v11 }
  0x4f   : > { %1416 = vmatmul.mubr.msk.bf16.vlgmr.msra.gmra.mrb[0].mxu0 %vm330_vm2, %v1707_v49 }
  0x50   : > { %1419 = vmatprep.mubr.msk.bf16.mxu0 %vm330_vm2, %v1045_v3 }
  0x57   : > { %1380 = vmatmul.mubr.msk.bf16.vlgmr.msra.gmra.mrb[4].mxu1 %vm330_vm2, %v688_v20  ;;  %1420 = vmatmul.mubr.msk.bf16.gmra.mrb[4].mxu0 %vm330_vm2, %v1047_v21 }
 0x116   : > { %v1367_v22 = vpop.f32.mrb[0].mxu1 }
 0x117   : > { %v633_v23 = vpop.f32.mrb[1].mxu1 }
 0x118   : > { %v1368_v24 = vpop.f32.mrb[2].mxu1 }
 0x119   : > { %v636_v25 = vpop.f32.mrb[3].mxu1 }
 0x122   : > { %v1417_v26 = vpop.f32.mrb[0].mxu0 }
 0x123   : > { %v1425_v27 = vadd.f32 %v1417_v26, %v1367_v22  ;;  %v1091_v28 = vpop.f32.mrb[1].mxu0 }
 0x124   : > { %v1426_v29 = vadd.f32 %v1091_v28, %v633_v23  ;;  %v1418_v30 = vpop.f32.mrb[2].mxu0 }
 0x125   : > { %1132 = vst.msk [vmem:[%s246_s23 + $0x10] sm:$0xff] %vm330_vm2, %v1425_v27  ;;  %v1427_v31 = vadd.f32 %v1418_v30, %v1368_v24  ;;  %v1094_v32 = vpop.f32.mrb[3].mxu0 }
 0x126   : > { %1130 = vst.msk [vmem:[%s246_s23] sm:$0xff] %vm330_vm2, %v1426_v29  ;;  %v1428_v33 = vadd.f32 %v1094_v32, %v636_v25 }
 0x127   : > { %1133 = vst.msk [vmem:[%s246_s23 + $0x18] sm:$0xff] %vm330_vm2, %v1427_v31 }
 0x128   : > { %1131 = vst.msk [vmem:[%s246_s23 + $0x8] sm:$0xff] %vm330_vm2, %v1428_v33 }
 0x12a   : > { %v1381_v34 = vpop.f32.mrb[4].mxu1  ;;  %v1421_v35 = vpop.f32.mrb[4].mxu0 }
 0x12b   : > { %v1429_v36 = vadd.f32 %v1421_v35, %v1381_v34  ;;  %v748_v37 = vpop.f32.mrb[5].mxu1  ;;  %v1107_v38 = vpop.f32.mrb[5].mxu0 }
 0x12c   : > { %v1430_v39 = vadd.f32 %v1107_v38, %v748_v37  ;;  %v1382_v40 = vpop.f32.mrb[6].mxu1  ;;  %v1422_v41 = vpop.f32.mrb[6].mxu0 }
 0x12d   : > { %1136 = vst.msk [vmem:[%s246_s23 + $0x30] sm:$0xff] %vm330_vm2, %v1429_v36  ;;  %v1431_v42 = vadd.f32 %v1422_v41, %v1382_v40  ;;  %v751_v43 = vpop.f32.mrb[7].mxu1  ;;  %v1110_v44 = vpop.f32.mrb[7].mxu0 }
 0x12e   : > { %1134 = vst.msk [vmem:[%s246_s23 + $0x20] sm:$0xff] %vm330_vm2, %v1430_v39  ;;  %v1432_v45 = vadd.f32 %v1110_v44, %v751_v43 }
 0x12f   : > { %1137 = vst.msk [vmem:[%s246_s23 + $0x38] sm:$0xff] %vm330_vm2, %v1431_v42 }
 0x130   : > { %1135 = vst.msk [vmem:[%s246_s23 + $0x28] sm:$0xff] %vm330_vm2, %v1432_v45 }
 0x131 PF: > { %s15_s20 = sadd.s32 1, %s1554_s20   ;;  %s1818_s18 = smov %s1550_s19 }
 0x132   : > { %p12_p5 = scmp.ge.s32.totalorder %s15_s20, 6   ;;  %s1819_s19 = smov %s1821_s2 }
 0x134   :  { %14 = sbr.rel (!%p12_p5) target bundleno = 2 (0x2), region = 79 }

// kernel: input_layer_forward.1
= control target key start
LH: loop header
LB: loop body
LE: loop exit
PB: predicated region body
PF: predicated region fallthrough
CT: control target
= control target key end

     0   :  { %s2180_s18 = smov 0   ;;  %s2182_s19 = smov 0   ;;  %s2822_s0 = inlined_call_operand.vmem [shape: bf16[12544,27], index: 0, kind: input, shape index: {}]   ;;  %s2823_s1 = inlined_call_operand.vmem [shape: bf16[27,64], index: 1, kind: input, shape index: {}]   ;;  %s2824_s2 = inlined_call_operand.vmem [shape: f32[1,64], index: 2, kind: input, shape index: {}]   ;;  %s2825_s3 = inlined_call_operand.vmem [shape: f32[1,64], index: 3, kind: input, shape index: {}]   ;;  %s2826_s4 = inlined_call_operand.vmem [shape: f32[1,64], index: 4, kind: input, shape index: {}]   ;;  %s2827_s5 = inlined_call_operand.vmem [shape: bf16[12544,64], index: 5, kind: output, shape index: {}]  }
   0x1   :  { %s2184_s20 = smov 0  }
   0x2 LB: > { %s27_s21 = sadd.s32 1, %s2142_s19  ;;  %p1793_p0 = scmp.ge.s32.totalorder %s2146_s20, 1  ;;  %s2146_s20 = sphi %s2184_s20, %s15_s20   ;;  %s2142_s19 = sphi %s2182_s19, %s2830_s19   ;;  %s2138_s18 = sphi %s2180_s18, %s2829_s18  }
   0x3   : > { %p29_p1 = scmp.ge.s32.totalorder %s27_s21, 28  ;;  %p216_p2 = scmp.lt.s32.totalorder %s2146_s20, 29 }
   0x5   : > { %s2832_s21 = smov (%p29_p1, %s27_s21), 0  ;;  %p217_p3 = pnand %p1793_p0, %p216_p2 }
   0x6   : > { %v2091_v0 = vld [vmem:[%s2823_s1] sm:$0xff] (!%p217_p3)   ;;  %vm687_vm0 = vcmask (!%p217_p3), 1044480   ;;  %v2206_v1 = vld [vmem:[%s2823_s1 + $0x8] sm:$0x3f] (!%p217_p3)   ;;  %vm688_vm1 = vcmask (!%p217_p3), 1045504   ;;  %s252_s26 = smul.u32 (!%p217_p3), 56, %s2138_s18 }
   0x7   : > { %220 = sbr.rel (%p217_p3) target bundleno = 353 (0x161), region = 40  ;;  %2001 = vmatprep.subr.bf16.mxu0 (!%p217_p3), %v2091_v0  ;;  %2061 = vmatprep.subr.bf16.mxu1 (!%p217_p3), %v2091_v0  ;;  %vm278_vm2 = vcmask (!%p217_p3), 523264   ;;  %v2148_v2 = vmov (!%p217_p3), 65535   ;;  %v2149_v5 = vmov (!%p217_p3), 0.0   ;;  %vm602_vm3 = vcmask (!%p217_p3), 220160  }
   0x8   : > { %2002 = vmatpush3.bf16.msra.mxu0 (!%p217_p3), %v2091_v0  ;;  %2063 = vmatpush3.bf16.msra.mxu1 (!%p217_p3), %v2091_v0  ;;  %v689_v3 = vsel (!%p217_p3), %vm687_vm0, 4294967295, %v2148_v2  ;;  %p2211_p4 = scmp.lt.s32.totalorder (!%p217_p3), %s252_s26, 1567  ;;  %281 = vst.msk [vmem:[#allocation2 + $0x10] sm:$0xff] (!%p217_p3), %vm278_vm2, %v2149_v5  ;;  %279 = vst.msk [vmem:[#allocation2] sm:$0xff] (!%p217_p3), %vm278_vm2, %v2149_v5  ;;  %v2353_v62 = vld [vmem:[%s2824_s2] ss:$0 sm:$0xff] (!%p217_p3) }
   0x9   : > { %v690_v4 = vsel (!%p217_p3), %vm688_vm1, %v689_v3, 0  ;;  %280 = vst.msk [vmem:[#allocation2 + $0x8] sm:$0xff] (!%p217_p3), %vm278_vm2, %v2149_v5  ;;  %282 = vst.msk [vmem:[#allocation2 + $0x18] sm:$0xff] (!%p217_p3), %vm278_vm2, %v2149_v5  ;;  %vm1648_vm4 = vcmask (!%p217_p3), 519168  }
   0xa   : > { %283 = vst.msk [vmem:[#allocation2 + $0x20] sm:$0xff] (!%p217_p3), %vm278_vm2, %v2149_v5  ;;  %284 = vst.msk [vmem:[#allocation2 + $0x28] sm:$0xff] (!%p217_p3), %vm278_vm2, %v2149_v5  ;;  %v692_v6 = vand.u32 (!%p217_p3), %v2206_v1, %v690_v4 }
   0xb   : > { %285 = vst.msk [vmem:[#allocation2 + $0x30] sm:$0xff] (!%p217_p3), %vm278_vm2, %v2149_v5  ;;  %286 = vst.msk [vmem:[#allocation2 + $0x38] sm:$0xff] (!%p217_p3), %vm278_vm2, %v2149_v5 }
   0xc   : > { %287 = vst.msk [vmem:[#allocation2 + $0x40] sm:$0xff] (!%p217_p3), %vm278_vm2, %v2149_v5  ;;  %288 = vst.msk [vmem:[#allocation2 + $0x48] sm:$0xff] (!%p217_p3), %vm278_vm2, %v2149_v5  ;;  %2003 = vmatprep.subr.bf16.mxu0 (!%p217_p3), %v692_v6  ;;  %2062 = vmatprep.subr.bf16.mxu1 (!%p217_p3), %v692_v6 }
   0xd   : > { %289 = vst.msk [vmem:[#allocation2 + $0x50] sm:$0xff] (!%p217_p3), %vm278_vm2, %v2149_v5  ;;  %290 = vst.msk [vmem:[#allocation2 + $0x58] sm:$0xff] (!%p217_p3), %vm278_vm2, %v2149_v5  ;;  %2004 = vmatpush3.bf16.msra.mxu0 (!%p217_p3), %v692_v6  ;;  %2064 = vmatpush3.bf16.msra.mxu1 (!%p217_p3), %v692_v6 }
   0xe   : > { %291 = vst.msk [vmem:[#allocation2 + $0x60] sm:$0xff] %vm278_vm2, %v2149_v5  ;;  %292 = vst.msk [vmem:[#allocation2 + $0x68] sm:$0xff] %vm278_vm2, %v2149_v5  ;;  %s2834_s26 = smov (!%p2211_p4, %s252_s26), 1567 }
   0xf   : > { %293 = vst.msk [vmem:[#allocation2 + $0x70] sm:$0xff] %vm278_vm2, %v2149_v5  ;;  %294 = vst.msk [vmem:[#allocation2 + $0x78] sm:$0xff] %vm278_vm2, %v2149_v5  ;;  %s1794_s28 = sshll.u32 %s2834_s26, 2  ;;  %v337_v35 = vld [vmem:[#allocation2 + $0x10] sm:$0xff]  ;;  %v335_v37 = vld [vmem:[#allocation2] sm:$0xff] }
  0x10   : > { %295 = vst.msk [vmem:[#allocation2 + $0x80] sm:$0xff] %vm278_vm2, %v2149_v5  ;;  %296 = vst.msk [vmem:[#allocation2 + $0x88] sm:$0xff] %vm278_vm2, %v2149_v5  ;;  %s2284_s6 = scalar_lea.vmem %s2822_s0, %s1794_s28  ;;  %v338_v40 = vld [vmem:[#allocation2 + $0x18] sm:$0xff]  ;;  %v336_v45 = vld [vmem:[#allocation2 + $0x8] sm:$0xff]  ;;  %s2395_s15 = scalar_lea.vmem %s2827_s5, %s1794_s28 }
  0x11   : > { %297 = vst.msk [vmem:[#allocation2 + $0x90] sm:$0xff] %vm278_vm2, %v2149_v5  ;;  %298 = vst.msk [vmem:[#allocation2 + $0x98] sm:$0xff] %vm278_vm2, %v2149_v5  ;;  %v2093_v7 = vld [vmem:[%s2284_s6] sm:$0xff]   ;;  %v2094_v8 = vld [vmem:[%s2284_s6 + $0x70] sm:$0xff]  }
  0x12   : > { %299 = vst.msk [vmem:[#allocation2 + $0xa0] sm:$0xff] %vm278_vm2, %v2149_v5  ;;  %300 = vst.msk [vmem:[#allocation2 + $0xa8] sm:$0xff] %vm278_vm2, %v2149_v5  ;;  %2005 = vmatprep.mubr.msk.bf16.mxu0 %vm602_vm3, %v2093_v7  ;;  %v2095_v9 = vld [vmem:[%s2284_s6 + $0x8] sm:$0xff]   ;;  %2033 = vmatprep.mubr.msk.bf16.mxu1 %vm602_vm3, %v2094_v8  ;;  %v2096_v10 = vld [vmem:[%s2284_s6 + $0x78] sm:$0xff]  }
  0x13   : > { %301 = vst.msk [vmem:[#allocation2 + $0xb0] sm:$0xff] %vm278_vm2, %v2149_v5  ;;  %302 = vst.msk [vmem:[#allocation2 + $0xb8] sm:$0xff] %vm278_vm2, %v2149_v5  ;;  %2006 = vmatmul.mubr.msk.bf16.vlgmr.msra.gmra.mrb[0].mxu0 %vm602_vm3, %v2095_v9  ;;  %v2097_v11 = vld [vmem:[%s2284_s6 + $0x10] sm:$0xff]   ;;  %2034 = vmatmul.mubr.msk.bf16.vlgmr.msra.gmra.mrb[0].mxu1 %vm602_vm3, %v2096_v10  ;;  %v2098_v12 = vld [vmem:[%s2284_s6 + $0x80] sm:$0xff]  }
  0x14   : > { %303 = vst.msk [vmem:[#allocation2 + $0xc0] sm:$0xff] %vm278_vm2, %v2149_v5  ;;  %304 = vst.msk [vmem:[#allocation2 + $0xc8] sm:$0xff] %vm278_vm2, %v2149_v5  ;;  %2009 = vmatprep.mubr.msk.bf16.mxu0 %vm602_vm3, %v2097_v11  ;;  %2037 = vmatprep.mubr.msk.bf16.mxu1 %vm602_vm3, %v2098_v12  ;;  %v2099_v13 = vld [vmem:[%s2284_s6 + $0x18] sm:$0xff]   ;;  %v2100_v14 = vld [vmem:[%s2284_s6 + $0x88] sm:$0xff]  }
  0x15   : > { %305 = vst.msk [vmem:[#allocation2 + $0xd0] sm:$0xff] %vm278_vm2, %v2149_v5  ;;  %306 = vst.msk [vmem:[#allocation2 + $0xd8] sm:$0xff] %vm278_vm2, %v2149_v5  ;;  %v2101_v15 = vld [vmem:[%s2284_s6 + $0x20] sm:$0xff]   ;;  %v2102_v16 = vld [vmem:[%s2284_s6 + $0x90] sm:$0xff]  }
  0x16   : > { %307 = vst.msk [vmem:[#allocation2 + $0xe0] sm:$0xff] %vm278_vm2, %v2149_v5  ;;  %308 = vst.msk [vmem:[#allocation2 + $0xe8] sm:$0xff] %vm278_vm2, %v2149_v5  ;;  %v2103_v17 = vld [vmem:[%s2284_s6 + $0x28] sm:$0xff]   ;;  %v2104_v18 = vld [vmem:[%s2284_s6 + $0x98] sm:$0xff]  }
  0x17   : > { %309 = vst.msk [vmem:[#allocation2 + $0xf0] sm:$0xff] %vm278_vm2, %v2149_v5  ;;  %310 = vst.msk [vmem:[#allocation2 + $0xf8] sm:$0xff] %vm278_vm2, %v2149_v5  ;;  %v2105_v19 = vld [vmem:[%s2284_s6 + $0x30] sm:$0xff]   ;;  %v2106_v20 = vld [vmem:[%s2284_s6 + $0xa0] sm:$0xff]  }
  0x18   : > { %311 = vst.msk [vmem:[#allocation2 + $0x100] sm:$0xff] %vm278_vm2, %v2149_v5  ;;  %312 = vst.msk [vmem:[#allocation2 + $0x108] sm:$0xff] %vm278_vm2, %v2149_v5  ;;  %v2107_v21 = vld [vmem:[%s2284_s6 + $0x38] sm:$0xff]   ;;  %v2108_v22 = vld [vmem:[%s2284_s6 + $0xa8] sm:$0xff]  }
  0x19   : > { %313 = vst.msk [vmem:[#allocation2 + $0x110] sm:$0xff] %vm278_vm2, %v2149_v5  ;;  %314 = vst.msk [vmem:[#allocation2 + $0x118] sm:$0xff] %vm278_vm2, %v2149_v5  ;;  %v2109_v23 = vld [vmem:[%s2284_s6 + $0x40] sm:$0xff]   ;;  %v2110_v24 = vld [vmem:[%s2284_s6 + $0xb0] sm:$0xff]  }
  0x1a   : > { %315 = vst.msk [vmem:[#allocation2 + $0x120] sm:$0xff] %vm278_vm2, %v2149_v5  ;;  %316 = vst.msk [vmem:[#allocation2 + $0x128] sm:$0xff] %vm278_vm2, %v2149_v5  ;;  %v2111_v25 = vld [vmem:[%s2284_s6 + $0x48] sm:$0xff]   ;;  %v2112_v26 = vld [vmem:[%s2284_s6 + $0xb8] sm:$0xff]  }
  0x1b   : > { %317 = vst.msk [vmem:[#allocation2 + $0x130] sm:$0xff] %vm278_vm2, %v2149_v5  ;;  %318 = vst.msk [vmem:[#allocation2 + $0x138] sm:$0xff] %vm278_vm2, %v2149_v5  ;;  %2010 = vmatmul.mubr.msk.bf16.gmra.mrb[4].mxu0 %vm602_vm3, %v2099_v13  ;;  %2038 = vmatmul.mubr.msk.bf16.gmra.mrb[4].mxu1 %vm602_vm3, %v2100_v14  ;;  %v2113_v27 = vld [vmem:[%s2284_s6 + $0x50] sm:$0xff]   ;;  %v2114_v28 = vld [vmem:[%s2284_s6 + $0xc0] sm:$0xff]  }
  0x1c   : > { %319 = vst.msk [vmem:[#allocation2 + $0x140] sm:$0xff] %vm278_vm2, %v2149_v5  ;;  %320 = vst.msk [vmem:[#allocation2 + $0x148] sm:$0xff] %vm278_vm2, %v2149_v5  ;;  %2013 = vmatprep.mubr.msk.bf16.mxu0 %vm602_vm3, %v2101_v15  ;;  %2041 = vmatprep.mubr.msk.bf16.mxu1 %vm602_vm3, %v2102_v16  ;;  %v2115_v29 = vld [vmem:[%s2284_s6 + $0x58] sm:$0xff]   ;;  %v2116_v30 = vld [vmem:[%s2284_s6 + $0xc8] sm:$0xff]  }
  0x1d   : > { %321 = vst.msk [vmem:[#allocation2 + $0x150] sm:$0xff] %vm278_vm2, %v2149_v5  ;;  %322 = vst.msk [vmem:[#allocation2 + $0x158] sm:$0xff] %vm278_vm2, %v2149_v5  ;;  %v2117_v31 = vld [vmem:[%s2284_s6 + $0x60] sm:$0xff]   ;;  %v2118_v32 = vld [vmem:[%s2284_s6 + $0xd0] sm:$0xff]  }
  0x1e   : > { %323 = vst.msk [vmem:[#allocation2 + $0x160] sm:$0xff] %vm278_vm2, %v2149_v5  ;;  %324 = vst.msk [vmem:[#allocation2 + $0x168] sm:$0xff] %vm278_vm2, %v2149_v5  ;;  %v2119_v33 = vld [vmem:[%s2284_s6 + $0x68] sm:$0xff]   ;;  %v2120_v34 = vld [vmem:[%s2284_s6 + $0xd8] sm:$0xff]  }
  0x1f   : > { %325 = vst.msk [vmem:[#allocation2 + $0x170] sm:$0xff] %vm278_vm2, %v2149_v5  ;;  %326 = vst.msk [vmem:[#allocation2 + $0x178] sm:$0xff] %vm278_vm2, %v2149_v5  ;;  %v365_v36 = vld [vmem:[#allocation2 + $0xf0] sm:$0xff]  ;;  %v363_v39 = vld [vmem:[#allocation2 + $0xe0] sm:$0xff] }
  0x20   : > { %327 = vst.msk [vmem:[#allocation2 + $0x180] sm:$0xff] %vm278_vm2, %v2149_v5  ;;  %328 = vst.msk [vmem:[#allocation2 + $0x188] sm:$0xff] %vm278_vm2, %v2149_v5  ;;  %v366_v44 = vld [vmem:[#allocation2 + $0xf8] sm:$0xff]  ;;  %v364_v50 = vld [vmem:[#allocation2 + $0xe8] sm:$0xff] }
  0x21   : > { %329 = vst.msk [vmem:[#allocation2 + $0x190] sm:$0xff] %vm278_vm2, %v2149_v5  ;;  %330 = vst.msk [vmem:[#allocation2 + $0x198] sm:$0xff] %vm278_vm2, %v2149_v5  ;;  %v341_v59 = vld [vmem:[#allocation2 + $0x30] sm:$0xff]  ;;  %v339_v61 = vld [vmem:[#allocation2 + $0x20] sm:$0xff] }
  0x22   : > { %331 = vst.msk [vmem:[#allocation2 + $0x1a0] sm:$0xff] %vm278_vm2, %v2149_v5  ;;  %332 = vst.msk [vmem:[#allocation2 + $0x1a8] sm:$0xff] %vm278_vm2, %v2149_v5  ;;  %v369_v60 = vld [vmem:[#allocation2 + $0x110] sm:$0xff]  ;;  %v367_v0 = vld [vmem:[#allocation2 + $0x100] sm:$0xff] }
  0x23   : > { %333 = vst.msk [vmem:[#allocation2 + $0x1b0] sm:$0xff] %vm278_vm2, %v2149_v5  ;;  %334 = vst.msk [vmem:[#allocation2 + $0x1b8] sm:$0xff] %vm278_vm2, %v2149_v5  ;;  %2014 = vmatmul.mubr.msk.bf16.gmra.mrb[8].mxu0 %vm602_vm3, %v2103_v17  ;;  %2042 = vmatmul.mubr.msk.bf16.gmra.mrb[8].mxu1 %vm602_vm3, %v2104_v18  ;;  %v342_v1 = vld [vmem:[#allocation2 + $0x38] sm:$0xff]  ;;  %v340_v6 = vld [vmem:[#allocation2 + $0x28] sm:$0xff] }
  0x24   : > { %2017 = vmatprep.mubr.msk.bf16.mxu0 %vm602_vm3, %v2105_v19  ;;  %2045 = vmatprep.mubr.msk.bf16.mxu1 %vm602_vm3, %v2106_v20  ;;  %v370_v5 = vld [vmem:[#allocation2 + $0x118] sm:$0xff]  ;;  %v2358_v8 = vld [vmem:[%s2825_s3] ss:$0 sm:$0xff]  ;;  %v368_v13 = vld [vmem:[#allocation2 + $0x108] sm:$0xff] }
  0x2b   : > { %2018 = vmatmul.mubr.msk.bf16.gmra.mrb[12].mxu0 %vm602_vm3, %v2107_v21  ;;  %2046 = vmatmul.mubr.msk.bf16.gmra.mrb[12].mxu1 %vm602_vm3, %v2108_v22  ;;  %v2365_v21 = vld [vmem:[%s2826_s4] ss:$0 sm:$0xff] }
  0x2c   : > { %2021 = vmatprep.mubr.msk.bf16.mxu0 %vm602_vm3, %v2109_v23  ;;  %2049 = vmatprep.mubr.msk.bf16.mxu1 %vm602_vm3, %v2110_v24 }
  0x33   : > { %2022 = vmatmul.mubr.msk.bf16.gmra.mrb[16].mxu0 %vm602_vm3, %v2111_v25  ;;  %2050 = vmatmul.mubr.msk.bf16.gmra.mrb[16].mxu1 %vm602_vm3, %v2112_v26 }
  0x34   : > { %2025 = vmatprep.mubr.msk.bf16.mxu0 %vm602_vm3, %v2113_v27  ;;  %2053 = vmatprep.mubr.msk.bf16.mxu1 %vm602_vm3, %v2114_v28 }
  0x3b   : > { %2026 = vmatmul.mubr.msk.bf16.gmra.mrb[20].mxu0 %vm602_vm3, %v2115_v29  ;;  %2054 = vmatmul.mubr.msk.bf16.gmra.mrb[20].mxu1 %vm602_vm3, %v2116_v30 }
  0x3c   : > { %2029 = vmatprep.mubr.msk.bf16.mxu0 %vm602_vm3, %v2117_v31  ;;  %2057 = vmatprep.mubr.msk.bf16.mxu1 %vm602_vm3, %v2118_v32 }
  0x43   : > { %2030 = vmatmul.mubr.msk.bf16.gmra.mrb[24].mxu0 %vm602_vm3, %v2119_v33  ;;  %2058 = vmatmul.mubr.msk.bf16.gmra.mrb[24].mxu1 %vm602_vm3, %v2120_v34 }
  0xe6   : > { %v2007_v38 = vpop.f32.mrb[0].mxu0  ;;  %v2035_v42 = vpop.f32.mrb[0].mxu1 }
  0xe7   : > { %v953_v41 = vadd.f32 %v2007_v38, %v337_v35  ;;  %v728_v43 = vpop.f32.mrb[1].mxu0  ;;  %v981_v46 = vadd.f32 %v2035_v42, %v365_v36  ;;  %v840_v48 = vpop.f32.mrb[1].mxu1 }
  0xe8   : > { %v951_v47 = vadd.f32 %v728_v43, %v335_v37  ;;  %v2008_v49 = vpop.f32.mrb[2].mxu0  ;;  %v979_v51 = vadd.f32 %v840_v48, %v363_v39  ;;  %v2036_v53 = vpop.f32.mrb[2].mxu1 }
  0xe9   : > { %1010 = vst.msk [vmem:[#allocation2 + $0x10] sm:$0xff] %vm278_vm2, %v953_v41  ;;  %v954_v52 = vadd.f32 %v2008_v49, %v338_v40  ;;  %v731_v54 = vpop.f32.mrb[3].mxu0  ;;  %1038 = vst.msk [vmem:[#allocation2 + $0xf0] sm:$0xff] %vm278_vm2, %v981_v46  ;;  %v982_v55 = vadd.f32 %v2036_v53, %v366_v44  ;;  %v843_v57 = vpop.f32.mrb[3].mxu1 }
  0xea   : > { %1008 = vst.msk [vmem:[#allocation2] sm:$0xff] %vm278_vm2, %v951_v47  ;;  %v952_v56 = vadd.f32 %v731_v54, %v336_v45  ;;  %1036 = vst.msk [vmem:[#allocation2 + $0xe0] sm:$0xff] %vm278_vm2, %v979_v51  ;;  %v980_v58 = vadd.f32 %v843_v57, %v364_v50 }
  0xeb   : > { %1011 = vst.msk [vmem:[#allocation2 + $0x18] sm:$0xff] %vm278_vm2, %v954_v52  ;;  %1039 = vst.msk [vmem:[#allocation2 + $0xf8] sm:$0xff] %vm278_vm2, %v982_v55 }
  0xec   : > { %1009 = vst.msk [vmem:[#allocation2 + $0x8] sm:$0xff] %vm278_vm2, %v952_v56  ;;  %1037 = vst.msk [vmem:[#allocation2 + $0xe8] sm:$0xff] %vm278_vm2, %v980_v58 }
  0xee   : > { %v2011_v63 = vpop.f32.mrb[4].mxu0  ;;  %v2039_v3 = vpop.f32.mrb[4].mxu1 }
  0xef   : > { %v957_v2 = vadd.f32 %v2011_v63, %v341_v59  ;;  %v744_v4 = vpop.f32.mrb[5].mxu0  ;;  %v985_v9 = vadd.f32 %v2039_v3, %v369_v60  ;;  %v856_v11 = vpop.f32.mrb[5].mxu1 }
  0xf0   : > { %v1069_v7 = vld [vmem:[#allocation2 + $0x10] sm:$0xff]  ;;  %v955_v10 = vadd.f32 %v744_v4, %v339_v61  ;;  %v2012_v12 = vpop.f32.mrb[6].mxu0  ;;  %v983_v17 = vadd.f32 %v856_v11, %v367_v0  ;;  %v2040_v19 = vpop.f32.mrb[6].mxu1 }
  0xf1   : > { %v1132_v14 = vmul.f32 %v2353_v62, %v1069_v7  ;;  %v1097_v15 = vld [vmem:[#allocation2 + $0xf0] sm:$0xff]  ;;  %v1067_v16 = vld [vmem:[#allocation2] sm:$0xff]  ;;  %1014 = vst.msk [vmem:[#allocation2 + $0x30] sm:$0xff] %vm278_vm2, %v957_v2  ;;  %v958_v18 = vadd.f32 %v2012_v12, %v342_v1  ;;  %v747_v20 = vpop.f32.mrb[7].mxu0  ;;  %1042 = vst.msk [vmem:[#allocation2 + $0x110] sm:$0xff] %vm278_vm2, %v985_v9  ;;  %v986_v26 = vadd.f32 %v2040_v19, %v370_v5  ;;  %v859_v28 = vpop.f32.mrb[7].mxu1 }
  0xf2   : > { %v1160_v22 = vmul.f32 %v2353_v62, %v1097_v15  ;;  %v1130_v23 = vmul.f32 %v2353_v62, %v1067_v16  ;;  %v1095_v24 = vld [vmem:[#allocation2 + $0xe0] sm:$0xff]  ;;  %v1070_v25 = vld [vmem:[#allocation2 + $0x18] sm:$0xff]  ;;  %1012 = vst.msk [vmem:[#allocation2 + $0x20] sm:$0xff] %vm278_vm2, %v955_v10  ;;  %v956_v27 = vadd.f32 %v747_v20, %v340_v6  ;;  %1040 = vst.msk [vmem:[#allocation2 + $0x100] sm:$0xff] %vm278_vm2, %v983_v17 }
  0xf3   : > { %v1195_v29 = vadd.f32 %v2358_v8, %v1132_v14  ;;  %v1158_v30 = vmul.f32 %v2353_v62, %v1095_v24  ;;  %v1133_v31 = vmul.f32 %v2353_v62, %v1070_v25  ;;  %v1098_v32 = vld [vmem:[#allocation2 + $0xf8] sm:$0xff]  ;;  %v1068_v33 = vld [vmem:[#allocation2 + $0x8] sm:$0xff]  ;;  %1015 = vst.msk [vmem:[#allocation2 + $0x38] sm:$0xff] %vm278_vm2, %v958_v18  ;;  %v984_v34 = vadd.f32 %v859_v28, %v368_v13 }
  0xf4   : > { %v1223_v35 = vadd.f32 %v2358_v8, %v1160_v22  ;;  %v1193_v36 = vadd.f32 %v2358_v8, %v1130_v23  ;;  %v1161_v37 = vmul.f32 %v2353_v62, %v1098_v32  ;;  %v1131_v38 = vmul.f32 %v2353_v62, %v1068_v33  ;;  %1043 = vst.msk [vmem:[#allocation2 + $0x118] sm:$0xff] %vm278_vm2, %v986_v26  ;;  %v1096_v47 = vld [vmem:[#allocation2 + $0xe8] sm:$0xff] }
  0xf5   : > { %1013 = vst.msk [vmem:[#allocation2 + $0x28] sm:$0xff] %vm278_vm2, %v956_v27  ;;  %vm1251_vm5 = vcmp.ge.f32.partialorder %v1195_v29, 0.0  ;;  %v1314_v39 = vmul.f32 %v2365_v21, %v1195_v29  ;;  %v1221_v40 = vadd.f32 %v2358_v8, %v1158_v30  ;;  %v1196_v41 = vadd.f32 %v2358_v8, %v1133_v31  ;;  %1041 = vst.msk [vmem:[#allocation2 + $0x108] sm:$0xff] %vm278_vm2, %v984_v34 }
  0xf6   : > { %vm1279_vm6 = vcmp.ge.f32.partialorder %v1223_v35, 0.0  ;;  %v1342_v42 = vmul.f32 %v2365_v21, %v1223_v35  ;;  %vm1249_vm7 = vcmp.ge.f32.partialorder %v1193_v36, 0.0  ;;  %v1312_v43 = vmul.f32 %v2365_v21, %v1193_v36  ;;  %v2388_v44 = vpop.f32.mrb[8].mxu0  ;;  %v2398_v48 = vpop.f32.mrb[8].mxu1 }
  0xf7   : > { %v1370_v45 = vsel %vm1251_vm5, %v1195_v29, %v1314_v39  ;;  %vm1277_vm8 = vcmp.ge.f32.partialorder %v1221_v40, 0.0  ;;  %v1340_v46 = vmul.f32 %v2365_v21, %v1221_v40  ;;  %vm1252_vm9 = vcmp.ge.f32.partialorder %v1196_v41, 0.0  ;;  %v2400_v49 = vpop.f32.mrb[9].mxu0  ;;  %v2403_v55 = vpop.f32.mrb[9].mxu1 }
  0xf8   : > { %v1917_v50 = vpack.c.bf16 %v1370_v45, %v1370_v45  ;;  %v1398_v51 = vsel %vm1279_vm6, %v1223_v35, %v1342_v42  ;;  %v1368_v52 = vsel %vm1249_vm7, %v1193_v36, %v1312_v43  ;;  %v1315_v53 = vmul.f32 %v2365_v21, %v1196_v41  ;;  %v1073_v54 = vld [vmem:[#allocation2 + $0x30] sm:$0xff]  ;;  %v2405_v56 = vpop.f32.mrb[10].mxu0  ;;  %v2408_v63 = vpop.f32.mrb[10].mxu1 }
  0xf9   : > { %v1945_v57 = vpack.c.bf16 %v1398_v51, %v1398_v51  ;;  %v1915_v58 = vpack.c.bf16 %v1368_v52, %v1368_v52  ;;  %v1396_v59 = vsel %vm1277_vm8, %v1221_v40, %v1340_v46  ;;  %v1224_v60 = vadd.f32 %v2358_v8, %v1161_v37  ;;  %v1101_v61 = vld [vmem:[#allocation2 + $0x110] sm:$0xff]  ;;  %v2410_v0 = vpop.f32.mrb[11].mxu0  ;;  %v1071_v5 = vld [vmem:[#allocation2 + $0x20] sm:$0xff]  ;;  %v2417_v7 = vpop.f32.mrb[11].mxu1 }
  0xfa   : > { %1651 = vst.msk [vmem:[%s2395_s15 + $0x8] sm:$0xf] %vm1648_vm4, %v1917_v50  ;;  %v1943_v1 = vpack.c.bf16 %v1396_v59, %v1396_v59  ;;  %v1371_v2 = vsel %vm1252_vm9, %v1196_v41, %v1315_v53  ;;  %v1194_v3 = vadd.f32 %v2358_v8, %v1131_v38  ;;  %v1159_v4 = vmul.f32 %v2353_v62, %v1096_v47  ;;  %v1099_v6 = vld [vmem:[#allocation2 + $0x100] sm:$0xff]  ;;  %v1074_v19 = vld [vmem:[#allocation2 + $0x38] sm:$0xff] }
  0xfb   : > { %1679 = vst.msk [vmem:[%s2395_s15 + $0x78] sm:$0xf] %vm1648_vm4, %v1945_v57  ;;  %1649 = vst.msk [vmem:[%s2395_s15] sm:$0xf] %vm1648_vm4, %v1915_v58  ;;  %v1918_v9 = vpack.c.bf16 %v1371_v2, %v1371_v2  ;;  %vm1280_vm10 = vcmp.ge.f32.partialorder %v1224_v60, 0.0  ;;  %v1343_v10 = vmul.f32 %v2365_v21, %v1224_v60  ;;  %v1136_v11 = vmul.f32 %v2353_v62, %v1073_v54  ;;  %v1102_v34 = vld [vmem:[#allocation2 + $0x118] sm:$0xff] }
  0xfc   : > { %1677 = vst.msk [vmem:[%s2395_s15 + $0x70] sm:$0xf] %vm1648_vm4, %v1943_v1  ;;  %vm1250_vm11 = vcmp.ge.f32.partialorder %v1194_v3, 0.0  ;;  %v1313_v12 = vmul.f32 %v2365_v21, %v1194_v3  ;;  %v1222_v13 = vadd.f32 %v2358_v8, %v1159_v4  ;;  %v1164_v14 = vmul.f32 %v2353_v62, %v1101_v61  ;;  %v1072_v40 = vld [vmem:[#allocation2 + $0x28] sm:$0xff]  ;;  %v373_v61 = vld [vmem:[#allocation2 + $0x130] sm:$0xff]  ;;  %v343_v1 = vld [vmem:[#allocation2 + $0x40] sm:$0xff] }
  0xfd   : > { %1652 = vst.msk [vmem:[%s2395_s15 + $0xc] sm:$0xf] %vm1648_vm4, %v1918_v9  ;;  %v1399_v15 = vsel %vm1280_vm10, %v1224_v60, %v1343_v10  ;;  %v1199_v16 = vadd.f32 %v2358_v8, %v1136_v11  ;;  %v1134_v17 = vmul.f32 %v2353_v62, %v1071_v5  ;;  %v1162_v18 = vmul.f32 %v2353_v62, %v1099_v6  ;;  %v1100_v41 = vld [vmem:[#allocation2 + $0x108] sm:$0xff]  ;;  %v345_v60 = vld [vmem:[#allocation2 + $0x50] sm:$0xff]  ;;  %v371_v11 = vld [vmem:[#allocation2 + $0x120] sm:$0xff] }
  0xfe   : > { %v1946_v20 = vpack.c.bf16 %v1399_v15, %v1399_v15  ;;  %v1369_v22 = vsel %vm1250_vm11, %v1194_v3, %v1313_v12  ;;  %vm1278_vm12 = vcmp.ge.f32.partialorder %v1222_v13, 0.0  ;;  %v1341_v23 = vmul.f32 %v2365_v21, %v1222_v13  ;;  %v2436_v24 = vpop.f32.mrb[12].mxu0  ;;  %v2440_v28 = vpop.f32.mrb[12].mxu1  ;;  %v346_v12 = vld [vmem:[#allocation2 + $0x58] sm:$0xff] }
  0xff   : > { %v1916_v25 = vpack.c.bf16 %v1369_v22, %v1369_v22  ;;  %vm1255_vm13 = vcmp.ge.f32.partialorder %v1199_v16, 0.0  ;;  %v1318_v26 = vmul.f32 %v2365_v21, %v1199_v16  ;;  %v1227_v27 = vadd.f32 %v2358_v8, %v1164_v14  ;;  %v2442_v29 = vpop.f32.mrb[13].mxu0  ;;  %v2449_v35 = vpop.f32.mrb[13].mxu1  ;;  %v349_v22 = vld [vmem:[#allocation2 + $0x70] sm:$0xff] }
 0x100   : > { %1680 = vst.msk [vmem:[%s2395_s15 + $0x7c] sm:$0xf] %vm1648_vm4, %v1946_v20  ;;  %v1397_v30 = vsel %vm1278_vm12, %v1222_v13, %v1341_v23  ;;  %v1197_v31 = vadd.f32 %v2358_v8, %v1134_v17  ;;  %v1225_v32 = vadd.f32 %v2358_v8, %v1162_v18  ;;  %v1137_v33 = vmul.f32 %v2353_v62, %v1074_v19  ;;  %v2451_v36 = vpop.f32.mrb[14].mxu0  ;;  %v2456_v42 = vpop.f32.mrb[14].mxu1  ;;  %v374_v13 = vld [vmem:[#allocation2 + $0x138] sm:$0xff]  ;;  %v344_v19 = vld [vmem:[#allocation2 + $0x48] sm:$0xff] }
 0x101   : > { %1650 = vst.msk [vmem:[%s2395_s15 + $0x4] sm:$0xf] %vm1648_vm4, %v1916_v25  ;;  %v1944_v37 = vpack.c.bf16 %v1397_v30, %v1397_v30  ;;  %v1374_v38 = vsel %vm1255_vm13, %v1199_v16, %v1318_v26  ;;  %vm1283_vm14 = vcmp.ge.f32.partialorder %v1227_v27, 0.0  ;;  %v1346_v39 = vmul.f32 %v2365_v21, %v1227_v27  ;;  %v2458_v43 = vpop.f32.mrb[15].mxu0  ;;  %v2461_v47 = vpop.f32.mrb[15].mxu1  ;;  %v372_v20 = vld [vmem:[#allocation2 + $0x128] sm:$0xff] }
 0x102   : > { %v1921_v45 = vpack.c.bf16 %v1374_v38, %v1374_v38  ;;  %vm1253_vm15 = vcmp.ge.f32.partialorder %v1197_v31, 0.0  ;;  %v1316_v46 = vmul.f32 %v2365_v21, %v1197_v31  ;;  %vm1281_vm0 = vcmp.ge.f32.partialorder %v1225_v32, 0.0  ;;  %v377_v30 = vld [vmem:[#allocation2 + $0x150] sm:$0xff]  ;;  %v378_v38 = vld [vmem:[#allocation2 + $0x158] sm:$0xff] }
 0x103   : > { %1678 = vst.msk [vmem:[%s2395_s15 + $0x74] sm:$0xf] %vm1648_vm4, %v1944_v37  ;;  %v1402_v50 = vsel %vm1283_vm14, %v1227_v27, %v1346_v39  ;;  %v1344_v51 = vmul.f32 %v2365_v21, %v1225_v32  ;;  %v1200_v52 = vadd.f32 %v2358_v8, %v1137_v33  ;;  %v1165_v53 = vmul.f32 %v2353_v62, %v1102_v34  ;;  %v375_v34 = vld [vmem:[#allocation2 + $0x140] sm:$0xff]  ;;  %v350_v37 = vld [vmem:[#allocation2 + $0x78] sm:$0xff] }
 0x104   : > { %1655 = vst.msk [vmem:[%s2395_s15 + $0x18] sm:$0xf] %vm1648_vm4, %v1921_v45  ;;  %v1949_v54 = vpack.c.bf16 %v1402_v50, %v1402_v50  ;;  %v1372_v57 = vsel %vm1253_vm15, %v1197_v31, %v1316_v46  ;;  %v1135_v58 = vmul.f32 %v2353_v62, %v1072_v40  ;;  %v1163_v59 = vmul.f32 %v2353_v62, %v1100_v41 }
 0x105   : > { %v1919_v2 = vpack.c.bf16 %v1372_v57, %v1372_v57  ;;  %v1400_v3 = vsel %vm1281_vm0, %v1225_v32, %v1344_v51  ;;  %vm1256_vm1 = vcmp.ge.f32.partialorder %v1200_v52, 0.0  ;;  %v1319_v4 = vmul.f32 %v2365_v21, %v1200_v52  ;;  %v348_v51 = vld [vmem:[#allocation2 + $0x68] sm:$0xff] }
 0x106   : > { %1683 = vst.msk [vmem:[%s2395_s15 + $0x88] sm:$0xf] %vm1648_vm4, %v1949_v54  ;;  %v1947_v5 = vpack.c.bf16 %v1400_v3, %v1400_v3  ;;  %v1228_v6 = vadd.f32 %v2358_v8, %v1165_v53  ;;  %v1198_v9 = vadd.f32 %v2358_v8, %v1135_v58  ;;  %v1226_v10 = vadd.f32 %v2358_v8, %v1163_v59  ;;  %v2479_v14 = vpop.f32.mrb[16].mxu0  ;;  %v2486_v23 = vpop.f32.mrb[16].mxu1  ;;  %v353_v53 = vld [vmem:[#allocation2 + $0x90] sm:$0xff]  ;;  %v354_v3 = vld [vmem:[#allocation2 + $0x98] sm:$0xff] }
 0x107   : > { %1653 = vst.msk [vmem:[%s2395_s15 + $0x10] sm:$0xf] %vm1648_vm4, %v1919_v2  ;;  %v1375_v15 = vsel %vm1256_vm1, %v1200_v52, %v1319_v4  ;;  %v961_v16 = vadd.f32 %v2388_v44, %v345_v60  ;;  %v989_v17 = vadd.f32 %v2398_v48, %v373_v61  ;;  %v959_v18 = vadd.f32 %v2400_v49, %v343_v1  ;;  %v2488_v25 = vpop.f32.mrb[17].mxu0  ;;  %v347_v44 = vld [vmem:[#allocation2 + $0x60] sm:$0xff]  ;;  %v2493_v48 = vpop.f32.mrb[17].mxu1  ;;  %v376_v52 = vld [vmem:[#allocation2 + $0x148] sm:$0xff] }
 0x108   : > { %1681 = vst.msk [vmem:[%s2395_s15 + $0x80] sm:$0xf] %vm1648_vm4, %v1947_v5  ;;  %v1922_v26 = vpack.c.bf16 %v1375_v15, %v1375_v15  ;;  %vm1284_vm3 = vcmp.ge.f32.partialorder %v1228_v6, 0.0  ;;  %v1347_v27 = vmul.f32 %v2365_v21, %v1228_v6  ;;  %vm1254_vm5 = vcmp.ge.f32.partialorder %v1198_v9, 0.0  ;;  %v2495_v49 = vpop.f32.mrb[18].mxu0  ;;  %v2052_v39 = vpop.f32.mrb[18].mxu1 }
 0x109   : > { %v1317_v31 = vmul.f32 %v2365_v21, %v1198_v9  ;;  %vm1282_vm6 = vcmp.ge.f32.partialorder %v1226_v10, 0.0  ;;  %v1345_v32 = vmul.f32 %v2365_v21, %v1226_v10  ;;  %1018 = vst.msk [vmem:[#allocation2 + $0x50] sm:$0xff] %vm278_vm2, %v961_v16  ;;  %1046 = vst.msk [vmem:[#allocation2 + $0x130] sm:$0xff] %vm278_vm2, %v989_v17  ;;  %v987_v33 = vadd.f32 %v2403_v55, %v371_v11  ;;  %v2503_v40 = vpop.f32.mrb[19].mxu0  ;;  %v907_v55 = vpop.f32.mrb[19].mxu1  ;;  %v381_v60 = vld [vmem:[#allocation2 + $0x170] sm:$0xff] }
 0x10a   : > { %1016 = vst.msk [vmem:[#allocation2 + $0x40] sm:$0xff] %vm278_vm2, %v959_v18  ;;  %v1403_v41 = vsel %vm1284_vm3, %v1228_v6, %v1347_v27  ;;  %v962_v45 = vadd.f32 %v2405_v56, %v346_v12  ;;  %v990_v46 = vadd.f32 %v2408_v63, %v374_v13  ;;  %v960_v50 = vadd.f32 %v2410_v0, %v344_v19  ;;  %v351_v56 = vld [vmem:[#allocation2 + $0x80] sm:$0xff]  ;;  %v382_v4 = vld [vmem:[#allocation2 + $0x178] sm:$0xff]  ;;  %v380_v11 = vld [vmem:[#allocation2 + $0x168] sm:$0xff] }
 0x10b   : > { %1656 = vst.msk [vmem:[%s2395_s15 + $0x1c] sm:$0xf] %vm1648_vm4, %v1922_v26  ;;  %v1950_v54 = vpack.c.bf16 %v1403_v41, %v1403_v41  ;;  %v1373_v57 = vsel %vm1254_vm5, %v1198_v9, %v1317_v31  ;;  %v1401_v58 = vsel %vm1282_vm6, %v1226_v10, %v1345_v32  ;;  %v988_v59 = vadd.f32 %v2417_v7, %v372_v20  ;;  %v379_v61 = vld [vmem:[#allocation2 + $0x160] sm:$0xff]  ;;  %v352_v7 = vld [vmem:[#allocation2 + $0x88] sm:$0xff]  ;;  %v357_v12 = vld [vmem:[#allocation2 + $0xb0] sm:$0xff] }
 0x10c   : > { %1044 = vst.msk [vmem:[#allocation2 + $0x120] sm:$0xff] %vm278_vm2, %v987_v33  ;;  %v1920_v63 = vpack.c.bf16 %v1373_v57, %v1373_v57  ;;  %v1948_v1 = vpack.c.bf16 %v1401_v58, %v1401_v58  ;;  %1019 = vst.msk [vmem:[#allocation2 + $0x58] sm:$0xff] %vm278_vm2, %v962_v45  ;;  %v965_v0 = vadd.f32 %v2436_v24, %v349_v22  ;;  %v385_v24 = vld [vmem:[#allocation2 + $0x190] sm:$0xff]  ;;  %v355_v13 = vld [vmem:[#allocation2 + $0xa0] sm:$0xff] }
 0x10d   : > { %1047 = vst.msk [vmem:[#allocation2 + $0x138] sm:$0xff] %vm278_vm2, %v990_v46  ;;  %1017 = vst.msk [vmem:[#allocation2 + $0x48] sm:$0xff] %vm278_vm2, %v960_v50  ;;  %v993_v2 = vadd.f32 %v2440_v28, %v377_v30  ;;  %v963_v5 = vadd.f32 %v2442_v29, %v347_v44  ;;  %v991_v6 = vadd.f32 %v2449_v35, %v375_v34  ;;  %v383_v15 = vld [vmem:[#allocation2 + $0x180] sm:$0xff]  ;;  %v358_v19 = vld [vmem:[#allocation2 + $0xb8] sm:$0xff] }
 0x10e   : > { %1684 = vst.msk [vmem:[%s2395_s15 + $0x8c] sm:$0xf] %vm1648_vm4, %v1950_v54  ;;  %v966_v9 = vadd.f32 %v2451_v36, %v350_v37  ;;  %v994_v10 = vadd.f32 %v2456_v42, %v378_v38  ;;  %1654 = vst.msk [vmem:[%s2395_s15 + $0x14] sm:$0xf] %vm1648_vm4, %v1920_v63  ;;  %v964_v28 = vadd.f32 %v2458_v43, %v348_v51  ;;  %v2027_v42 = vpop.f32.mrb[20].mxu0  ;;  %v2055_v17 = vpop.f32.mrb[20].mxu1 }
 0x10f   : > { %1045 = vst.msk [vmem:[#allocation2 + $0x128] sm:$0xff] %vm278_vm2, %v988_v59  ;;  %1022 = vst.msk [vmem:[#allocation2 + $0x70] sm:$0xff] %vm278_vm2, %v965_v0  ;;  %v992_v29 = vadd.f32 %v2461_v47, %v376_v52  ;;  %v969_v35 = vadd.f32 %v2479_v14, %v353_v53  ;;  %v997_v36 = vadd.f32 %v2486_v23, %v381_v60  ;;  %v808_v18 = vpop.f32.mrb[21].mxu0  ;;  %v386_v20 = vld [vmem:[#allocation2 + $0x198] sm:$0xff]  ;;  %v356_v22 = vld [vmem:[#allocation2 + $0xa8] sm:$0xff] }
 0x110   : > { %1682 = vst.msk [vmem:[%s2395_s15 + $0x84] sm:$0xf] %vm1648_vm4, %v1948_v1  ;;  %v967_v16 = vadd.f32 %v2488_v25, %v351_v56  ;;  %v995_v43 = vadd.f32 %v2493_v48, %v379_v61  ;;  %v970_v47 = vadd.f32 %v2495_v49, %v354_v3  ;;  %v998_v14 = vadd.f32 %v2052_v39, %v382_v4  ;;  %v1077_v23 = vld [vmem:[#allocation2 + $0x50] sm:$0xff]  ;;  %v920_v49 = vpop.f32.mrb[21].mxu1  ;;  %v2028_v31 = vpop.f32.mrb[22].mxu0 }
 0x111   : > { %1050 = vst.msk [vmem:[#allocation2 + $0x150] sm:$0xff] %vm278_vm2, %v993_v2  ;;  %1020 = vst.msk [vmem:[#allocation2 + $0x60] sm:$0xff] %vm278_vm2, %v963_v5  ;;  %v1105_v26 = vld [vmem:[#allocation2 + $0x130] sm:$0xff]  ;;  %v1075_v27 = vld [vmem:[#allocation2 + $0x40] sm:$0xff]  ;;  %v968_v25 = vadd.f32 %v2503_v40, %v352_v7  ;;  %v996_v30 = vadd.f32 %v907_v55, %v380_v11  ;;  %v973_v44 = vadd.f32 %v2027_v42, %v357_v12  ;;  %v2056_v38 = vpop.f32.mrb[22].mxu1  ;;  %v811_v39 = vpop.f32.mrb[23].mxu0 }
 0x112   : > { %1048 = vst.msk [vmem:[#allocation2 + $0x140] sm:$0xff] %vm278_vm2, %v991_v6  ;;  %1023 = vst.msk [vmem:[#allocation2 + $0x78] sm:$0xff] %vm278_vm2, %v966_v9  ;;  %v1001_v48 = vadd.f32 %v2055_v17, %v385_v24  ;;  %v1140_v32 = vmul.f32 %v2353_v62, %v1077_v23  ;;  %v1168_v33 = vmul.f32 %v2353_v62, %v1105_v26  ;;  %v384_v40 = vld [vmem:[#allocation2 + $0x188] sm:$0xff]  ;;  %v923_v52 = vpop.f32.mrb[23].mxu1 }
 0x113   : > { %1051 = vst.msk [vmem:[#allocation2 + $0x158] sm:$0xff] %vm278_vm2, %v994_v10  ;;  %1021 = vst.msk [vmem:[#allocation2 + $0x68] sm:$0xff] %vm278_vm2, %v964_v28  ;;  %v1138_v34 = vmul.f32 %v2353_v62, %v1075_v27  ;;  %v971_v37 = vadd.f32 %v808_v18, %v355_v13  ;;  %v1103_v41 = vld [vmem:[#allocation2 + $0x120] sm:$0xff]  ;;  %v999_v45 = vadd.f32 %v920_v49, %v383_v15  ;;  %v1078_v58 = vld [vmem:[#allocation2 + $0x58] sm:$0xff] }
 0x114   : > { %1049 = vst.msk [vmem:[#allocation2 + $0x148] sm:$0xff] %vm278_vm2, %v992_v29  ;;  %1026 = vst.msk [vmem:[#allocation2 + $0x90] sm:$0xff] %vm278_vm2, %v969_v35  ;;  %v974_v46 = vadd.f32 %v2028_v31, %v358_v19  ;;  %v1002_v50 = vadd.f32 %v2056_v38, %v386_v20  ;;  %v972_v51 = vadd.f32 %v811_v39, %v356_v22  ;;  %v1106_v59 = vld [vmem:[#allocation2 + $0x138] sm:$0xff]  ;;  %v1076_v60 = vld [vmem:[#allocation2 + $0x48] sm:$0xff] }
 0x115   : > { %1054 = vst.msk [vmem:[#allocation2 + $0x170] sm:$0xff] %vm278_vm2, %v997_v36  ;;  %1024 = vst.msk [vmem:[#allocation2 + $0x80] sm:$0xff] %vm278_vm2, %v967_v16  ;;  %v1203_v53 = vadd.f32 %v2358_v8, %v1140_v32  ;;  %v1231_v55 = vadd.f32 %v2358_v8, %v1168_v33  ;;  %v1201_v54 = vadd.f32 %v2358_v8, %v1138_v34 }
 0x116   : > { %1052 = vst.msk [vmem:[#allocation2 + $0x160] sm:$0xff] %vm278_vm2, %v995_v43  ;;  %1027 = vst.msk [vmem:[#allocation2 + $0x98] sm:$0xff] %vm278_vm2, %v970_v47  ;;  %v1166_v57 = vmul.f32 %v2353_v62, %v1103_v41  ;;  %v1141_v56 = vmul.f32 %v2353_v62, %v1078_v58  ;;  %v1169_v61 = vmul.f32 %v2353_v62, %v1106_v59  ;;  %v2578_v5 = vpop.f32.mrb[24].mxu0  ;;  %v2582_v12 = vpop.f32.mrb[24].mxu1  ;;  %v1104_v36 = vld [vmem:[#allocation2 + $0x128] sm:$0xff]  ;;  %v1081_v42 = vld [vmem:[#allocation2 + $0x70] sm:$0xff] }
 0x117   : > { %1055 = vst.msk [vmem:[#allocation2 + $0x178] sm:$0xff] %vm278_vm2, %v998_v14  ;;  %1025 = vst.msk [vmem:[#allocation2 + $0x88] sm:$0xff] %vm278_vm2, %v968_v25  ;;  %v1139_v63 = vmul.f32 %v2353_v62, %v1076_v60  ;;  %v1000_v1 = vadd.f32 %v923_v52, %v384_v40  ;;  %vm1259_vm7 = vcmp.ge.f32.partialorder %v1203_v53, 0.0  ;;  %v1322_v0 = vmul.f32 %v2365_v21, %v1203_v53  ;;  %v2584_v24 = vpop.f32.mrb[25].mxu0  ;;  %v2586_v13 = vpop.f32.mrb[25].mxu1 }
 0x118   : > { %1053 = vst.msk [vmem:[#allocation2 + $0x168] sm:$0xff] %vm278_vm2, %v996_v30  ;;  %1030 = vst.msk [vmem:[#allocation2 + $0xb0] sm:$0xff] %vm278_vm2, %v973_v44  ;;  %vm1287_vm8 = vcmp.ge.f32.partialorder %v1231_v55, 0.0  ;;  %v1350_v2 = vmul.f32 %v2365_v21, %v1231_v55  ;;  %vm1257_vm9 = vcmp.ge.f32.partialorder %v1201_v54, 0.0  ;;  %v1320_v3 = vmul.f32 %v2365_v21, %v1201_v54  ;;  %v2588_v15 = vpop.f32.mrb[26].mxu0  ;;  %v2592_v14 = vpop.f32.mrb[26].mxu1 }
 0x119   : > { %1058 = vst.msk [vmem:[#allocation2 + $0x190] sm:$0xff] %vm278_vm2, %v1001_v48  ;;  %1028 = vst.msk [vmem:[#allocation2 + $0xa0] sm:$0xff] %vm278_vm2, %v971_v37  ;;  %v1229_v4 = vadd.f32 %v2358_v8, %v1166_v57  ;;  %v1204_v7 = vadd.f32 %v2358_v8, %v1141_v56  ;;  %v1378_v6 = vsel %vm1259_vm7, %v1203_v53, %v1322_v0  ;;  %v2594_v17 = vpop.f32.mrb[27].mxu0  ;;  %v1109_v20 = vld [vmem:[#allocation2 + $0x150] sm:$0xff]  ;;  %v2602_v22 = vpop.f32.mrb[27].mxu1  ;;  %v1079_v30 = vld [vmem:[#allocation2 + $0x60] sm:$0xff] }
 0x11a   : > { %1056 = vst.msk [vmem:[#allocation2 + $0x180] sm:$0xff] %vm278_vm2, %v999_v45  ;;  %1031 = vst.msk [vmem:[#allocation2 + $0xb8] sm:$0xff] %vm278_vm2, %v974_v46  ;;  %v1406_v9 = vsel %vm1287_vm8, %v1231_v55, %v1350_v2  ;;  %v1232_v10 = vadd.f32 %v2358_v8, %v1169_v61  ;;  %v1202_v11 = vadd.f32 %v2358_v8, %v1139_v63  ;;  %v1107_v44 = vld [vmem:[#allocation2 + $0x140] sm:$0xff]  ;;  %v1082_v48 = vld [vmem:[#allocation2 + $0x78] sm:$0xff] }
 0x11b   : > { %1059 = vst.msk [vmem:[#allocation2 + $0x198] sm:$0xff] %vm278_vm2, %v1002_v50  ;;  %1029 = vst.msk [vmem:[#allocation2 + $0xa8] sm:$0xff] %vm278_vm2, %v972_v51  ;;  %v1925_v28 = vpack.c.bf16 %v1378_v6, %v1378_v6  ;;  %v1953_v29 = vpack.c.bf16 %v1406_v9, %v1406_v9  ;;  %v1376_v35 = vsel %vm1257_vm9, %v1201_v54, %v1320_v3  ;;  %vm1285_vm10 = vcmp.ge.f32.partialorder %v1229_v4, 0.0  ;;  %v1110_v50 = vld [vmem:[#allocation2 + $0x158] sm:$0xff]  ;;  %v1080_v51 = vld [vmem:[#allocation2 + $0x68] sm:$0xff] }
 0x11c   : > { %1057 = vst.msk [vmem:[#allocation2 + $0x188] sm:$0xff] %vm278_vm2, %v1000_v1  ;;  %v1923_v16 = vpack.c.bf16 %v1376_v35, %v1376_v35  ;;  %v1348_v43 = vmul.f32 %v2365_v21, %v1229_v4  ;;  %vm1260_vm11 = vcmp.ge.f32.partialorder %v1204_v7, 0.0  ;;  %v1323_v47 = vmul.f32 %v2365_v21, %v1204_v7  ;;  %v1108_v9 = vld [vmem:[#allocation2 + $0x148] sm:$0xff]  ;;  %v1085_v35 = vld [vmem:[#allocation2 + $0x90] sm:$0xff] }
 0x11d   : > { %1659 = vst.msk [vmem:[%s2395_s15 + $0x28] sm:$0xf] %vm1648_vm4, %v1925_v28  ;;  %1687 = vst.msk [vmem:[%s2395_s15 + $0x98] sm:$0xf] %vm1648_vm4, %v1953_v29  ;;  %vm1288_vm12 = vcmp.ge.f32.partialorder %v1232_v10, 0.0  ;;  %v1351_v18 = vmul.f32 %v2365_v21, %v1232_v10  ;;  %vm1258_vm13 = vcmp.ge.f32.partialorder %v1202_v11, 0.0  ;;  %v1321_v19 = vmul.f32 %v2365_v21, %v1202_v11 }
 0x11e   : > { %1657 = vst.msk [vmem:[%s2395_s15 + $0x20] sm:$0xf] %vm1648_vm4, %v1923_v16  ;;  %v1404_v23 = vsel %vm1285_vm10, %v1229_v4, %v1348_v43  ;;  %v1379_v26 = vsel %vm1260_vm11, %v1204_v7, %v1323_v47  ;;  %v1167_v27 = vmul.f32 %v2353_v62, %v1104_v36  ;;  %v1144_v25 = vmul.f32 %v2353_v62, %v1081_v42  ;;  %v1113_v36 = vld [vmem:[#allocation2 + $0x170] sm:$0xff]  ;;  %v1083_v42 = vld [vmem:[#allocation2 + $0x80] sm:$0xff] }
 0x11f   : > { %v1951_v49 = vpack.c.bf16 %v1404_v23, %v1404_v23  ;;  %v1926_v31 = vpack.c.bf16 %v1379_v26, %v1379_v26  ;;  %v1407_v32 = vsel %vm1288_vm12, %v1232_v10, %v1351_v18  ;;  %v1377_v33 = vsel %vm1258_vm13, %v1202_v11, %v1321_v19  ;;  %v1111_v18 = vld [vmem:[#allocation2 + $0x160] sm:$0xff]  ;;  %v1086_v19 = vld [vmem:[#allocation2 + $0x98] sm:$0xff] }
 0x120   : > { %v1954_v34 = vpack.c.bf16 %v1407_v32, %v1407_v32  ;;  %v1924_v37 = vpack.c.bf16 %v1377_v33, %v1377_v33  ;;  %v1230_v38 = vadd.f32 %v2358_v8, %v1167_v27  ;;  %v1207_v39 = vadd.f32 %v2358_v8, %v1144_v25 }
 0x121   : > { %1685 = vst.msk [vmem:[%s2395_s15 + $0x90] sm:$0xf] %vm1648_vm4, %v1951_v49  ;;  %1660 = vst.msk [vmem:[%s2395_s15 + $0x2c] sm:$0xf] %vm1648_vm4, %v1926_v31  ;;  %v1172_v40 = vmul.f32 %v2353_v62, %v1109_v20  ;;  %v1142_v41 = vmul.f32 %v2353_v62, %v1079_v30  ;;  %v1170_v45 = vmul.f32 %v2353_v62, %v1107_v44 }
 0x122   : > { %v1145_v46 = vmul.f32 %v2353_v62, %v1082_v48  ;;  %1688 = vst.msk [vmem:[%s2395_s15 + $0x9c] sm:$0xf] %vm1648_vm4, %v1954_v34  ;;  %1658 = vst.msk [vmem:[%s2395_s15 + $0x24] sm:$0xf] %vm1648_vm4, %v1924_v37  ;;  %vm1286_vm14 = vcmp.ge.f32.partialorder %v1230_v38, 0.0  ;;  %v1349_v52 = vmul.f32 %v2365_v21, %v1230_v38  ;;  %vm1263_vm15 = vcmp.ge.f32.partialorder %v1207_v39, 0.0 }
 0x123   : > { %v1326_v53 = vmul.f32 %v2365_v21, %v1207_v39  ;;  %v1235_v55 = vadd.f32 %v2358_v8, %v1172_v40  ;;  %v1205_v54 = vadd.f32 %v2358_v8, %v1142_v41  ;;  %v1233_v57 = vadd.f32 %v2358_v8, %v1170_v45 }
 0x124   : > { %v1208_v58 = vadd.f32 %v2358_v8, %v1145_v46  ;;  %v1405_v59 = vsel %vm1286_vm14, %v1230_v38, %v1349_v52  ;;  %v1173_v56 = vmul.f32 %v2353_v62, %v1110_v50  ;;  %v1143_v61 = vmul.f32 %v2353_v62, %v1080_v51 }
 0x125   : > { %v1382_v60 = vsel %vm1263_vm15, %v1207_v39, %v1326_v53  ;;  %v1952_v63 = vpack.c.bf16 %v1405_v59, %v1405_v59  ;;  %vm1291_vm0 = vcmp.ge.f32.partialorder %v1235_v55, 0.0  ;;  %v1354_v0 = vmul.f32 %v2365_v21, %v1235_v55  ;;  %v1112_v59 = vld [vmem:[#allocation2 + $0x168] sm:$0xff] }
 0x126   : > { %v1929_v1 = vpack.c.bf16 %v1382_v60, %v1382_v60  ;;  %vm1261_vm1 = vcmp.ge.f32.partialorder %v1205_v54, 0.0  ;;  %v1324_v2 = vmul.f32 %v2365_v21, %v1205_v54  ;;  %vm1289_vm3 = vcmp.ge.f32.partialorder %v1233_v57, 0.0 }
 0x127   : > { %v1352_v3 = vmul.f32 %v2365_v21, %v1233_v57  ;;  %1686 = vst.msk [vmem:[%s2395_s15 + $0x94] sm:$0xf] %vm1648_vm4, %v1952_v63  ;;  %v1410_v4 = vsel %vm1291_vm0, %v1235_v55, %v1354_v0  ;;  %vm1264_vm5 = vcmp.ge.f32.partialorder %v1208_v58, 0.0  ;;  %v1327_v7 = vmul.f32 %v2365_v21, %v1208_v58  ;;  %v1117_v0 = vld [vmem:[#allocation2 + $0x190] sm:$0xff] }
 0x128   : > { %1663 = vst.msk [vmem:[%s2395_s15 + $0x38] sm:$0xf] %vm1648_vm4, %v1929_v1  ;;  %v1236_v6 = vadd.f32 %v2358_v8, %v1173_v56  ;;  %v1957_v10 = vpack.c.bf16 %v1410_v4, %v1410_v4  ;;  %v1380_v11 = vsel %vm1261_vm1, %v1205_v54, %v1324_v2  ;;  %v1206_v29 = vadd.f32 %v2358_v8, %v1143_v61  ;;  %v1089_v1 = vld [vmem:[#allocation2 + $0xb0] sm:$0xff]  ;;  %v1087_v2 = vld [vmem:[#allocation2 + $0xa0] sm:$0xff] }
 0x129   : > { %v1408_v28 = vsel %vm1289_vm3, %v1233_v57, %v1352_v3  ;;  %v1927_v16 = vpack.c.bf16 %v1380_v11, %v1380_v11  ;;  %v1383_v47 = vsel %vm1264_vm5, %v1208_v58, %v1327_v7  ;;  %v1171_v27 = vmul.f32 %v2353_v62, %v1108_v9  ;;  %v1114_v57 = vld [vmem:[#allocation2 + $0x178] sm:$0xff]  ;;  %v1084_v58 = vld [vmem:[#allocation2 + $0x88] sm:$0xff] }
 0x12a   : > { %v1955_v43 = vpack.c.bf16 %v1408_v28, %v1408_v28  ;;  %vm1292_vm6 = vcmp.ge.f32.partialorder %v1236_v6, 0.0  ;;  %1691 = vst.msk [vmem:[%s2395_s15 + $0xa8] sm:$0xf] %vm1648_vm4, %v1957_v10  ;;  %v1930_v20 = vpack.c.bf16 %v1383_v47, %v1383_v47  ;;  %v1355_v23 = vmul.f32 %v2365_v21, %v1236_v6 }
 0x12b   : > { %vm1262_vm7 = vcmp.ge.f32.partialorder %v1206_v29, 0.0  ;;  %v1325_v26 = vmul.f32 %v2365_v21, %v1206_v29  ;;  %1661 = vst.msk [vmem:[%s2395_s15 + $0x30] sm:$0xf] %vm1648_vm4, %v1927_v16  ;;  %v1148_v25 = vmul.f32 %v2353_v62, %v1085_v35  ;;  %v1176_v30 = vmul.f32 %v2353_v62, %v1113_v36 }
 0x12c   : > { %1689 = vst.msk [vmem:[%s2395_s15 + $0xa0] sm:$0xf] %vm1648_vm4, %v1955_v43  ;;  %v1146_v44 = vmul.f32 %v2353_v62, %v1083_v42  ;;  %1664 = vst.msk [vmem:[%s2395_s15 + $0x3c] sm:$0xf] %vm1648_vm4, %v1930_v20  ;;  %v1411_v48 = vsel %vm1292_vm6, %v1236_v6, %v1355_v23  ;;  %v1174_v31 = vmul.f32 %v2353_v62, %v1111_v18  ;;  %v1115_v6 = vld [vmem:[#allocation2 + $0x180] sm:$0xff] }
 0x12d   : > { %v1381_v49 = vsel %vm1262_vm7, %v1206_v29, %v1325_v26  ;;  %v1149_v32 = vmul.f32 %v2353_v62, %v1086_v19  ;;  %v1958_v33 = vpack.c.bf16 %v1411_v48, %v1411_v48  ;;  %v1234_v37 = vadd.f32 %v2358_v8, %v1171_v27 }
 0x12e   : > { %v1928_v34 = vpack.c.bf16 %v1381_v49, %v1381_v49  ;;  %v1211_v38 = vadd.f32 %v2358_v8, %v1148_v25  ;;  %v1239_v39 = vadd.f32 %v2358_v8, %v1176_v30  ;;  %v1209_v40 = vadd.f32 %v2358_v8, %v1146_v44 }
 0x12f   : > { %v1237_v41 = vadd.f32 %v2358_v8, %v1174_v31  ;;  %v1212_v45 = vadd.f32 %v2358_v8, %v1149_v32  ;;  %1692 = vst.msk [vmem:[%s2395_s15 + $0xac] sm:$0xf] %vm1648_vm4, %v1958_v33  ;;  %vm1290_vm8 = vcmp.ge.f32.partialorder %v1234_v37, 0.0  ;;  %v1353_v46 = vmul.f32 %v2365_v21, %v1234_v37  ;;  %v1090_v31 = vld [vmem:[#allocation2 + $0xb8] sm:$0xff] }
 0x130   : > { %1662 = vst.msk [vmem:[%s2395_s15 + $0x34] sm:$0xf] %vm1648_vm4, %v1928_v34  ;;  %vm1267_vm9 = vcmp.ge.f32.partialorder %v1211_v38, 0.0  ;;  %v1330_v50 = vmul.f32 %v2365_v21, %v1211_v38  ;;  %vm1295_vm10 = vcmp.ge.f32.partialorder %v1239_v39, 0.0  ;;  %v1358_v51 = vmul.f32 %v2365_v21, %v1239_v39  ;;  %v1118_v32 = vld [vmem:[#allocation2 + $0x198] sm:$0xff] }
 0x131   : > { %vm1265_vm11 = vcmp.ge.f32.partialorder %v1209_v40, 0.0  ;;  %v1328_v52 = vmul.f32 %v2365_v21, %v1209_v40  ;;  %v1409_v53 = vsel %vm1290_vm8, %v1234_v37, %v1353_v46  ;;  %vm1293_vm12 = vcmp.ge.f32.partialorder %v1237_v41, 0.0 }
 0x132   : > { %v1386_v55 = vsel %vm1267_vm9, %v1211_v38, %v1330_v50  ;;  %v1356_v54 = vmul.f32 %v2365_v21, %v1237_v41  ;;  %v1956_v60 = vpack.c.bf16 %v1409_v53, %v1409_v53  ;;  %v1414_v61 = vsel %vm1295_vm10, %v1239_v39, %v1358_v51  ;;  %v1088_v39 = vld [vmem:[#allocation2 + $0xa8] sm:$0xff]  ;;  %v2712_v53 = vld [vmem:[%s2824_s2] ss:$0 sm:$0xff] }
 0x133   : > { %v1933_v56 = vpack.c.bf16 %v1386_v55, %v1386_v55  ;;  %v1384_v63 = vsel %vm1265_vm11, %v1209_v40, %v1328_v52  ;;  %v1961_v3 = vpack.c.bf16 %v1414_v61, %v1414_v61  ;;  %vm1268_vm13 = vcmp.ge.f32.partialorder %v1212_v45, 0.0  ;;  %v1116_v40 = vld [vmem:[#allocation2 + $0x188] sm:$0xff] }
 0x134   : > { %v1931_v4 = vpack.c.bf16 %v1384_v63, %v1384_v63  ;;  %v1412_v7 = vsel %vm1293_vm12, %v1237_v41, %v1356_v54  ;;  %1690 = vst.msk [vmem:[%s2395_s15 + $0xa4] sm:$0xf] %vm1648_vm4, %v1956_v60  ;;  %v1331_v10 = vmul.f32 %v2365_v21, %v1212_v45  ;;  %v1177_v11 = vmul.f32 %v2353_v62, %v1114_v57  ;;  %v361_v57 = vld [vmem:[#allocation2 + $0xd0] sm:$0xff] }
 0x135   : > { %1667 = vst.msk [vmem:[%s2395_s15 + $0x48] sm:$0xf] %vm1648_vm4, %v1933_v56  ;;  %v1959_v9 = vpack.c.bf16 %v1412_v7, %v1412_v7  ;;  %v1147_v28 = vmul.f32 %v2353_v62, %v1084_v58  ;;  %1695 = vst.msk [vmem:[%s2395_s15 + $0xb8] sm:$0xf] %vm1648_vm4, %v1961_v3  ;;  %v1175_v29 = vmul.f32 %v2353_v62, %v1112_v59  ;;  %v2729_v56 = vld [vmem:[%s2825_s3] ss:$0 sm:$0xff] }
 0x136   : > { %1665 = vst.msk [vmem:[%s2395_s15 + $0x40] sm:$0xf] %vm1648_vm4, %v1931_v4  ;;  %v1152_v35 = vmul.f32 %v2353_v62, %v1089_v1  ;;  %v1180_v36 = vmul.f32 %v2353_v62, %v1117_v0  ;;  %v1150_v42 = vmul.f32 %v2353_v62, %v1087_v2  ;;  %v1387_v16 = vsel %vm1268_vm13, %v1212_v45, %v1331_v10  ;;  %v359_v10 = vld [vmem:[#allocation2 + $0xc0] sm:$0xff] }
 0x137   : > { %1693 = vst.msk [vmem:[%s2395_s15 + $0xb0] sm:$0xf] %vm1648_vm4, %v1959_v9  ;;  %v1240_v43 = vadd.f32 %v2358_v8, %v1177_v11  ;;  %v1210_v47 = vadd.f32 %v2358_v8, %v1147_v28  ;;  %v1178_v18 = vmul.f32 %v2353_v62, %v1115_v6  ;;  %v1934_v19 = vpack.c.bf16 %v1387_v16, %v1387_v16  ;;  %v389_v9 = vld [vmem:[#allocation2 + $0x1b0] sm:$0xff]  ;;  %v2740_v28 = vld [vmem:[%s2826_s4] ss:$0 sm:$0xff]  ;;  %v390_v16 = vld [vmem:[#allocation2 + $0x1b8] sm:$0xff] }
 0x138   : > { %v1238_v20 = vadd.f32 %v2358_v8, %v1175_v29  ;;  %v1215_v23 = vadd.f32 %v2358_v8, %v1152_v35  ;;  %v1243_v26 = vadd.f32 %v2358_v8, %v1180_v36  ;;  %v1213_v50 = vadd.f32 %v2358_v8, %v1150_v42  ;;  %v362_v42 = vld [vmem:[#allocation2 + $0xd8] sm:$0xff] }
 0x139   : > { %vm1296_vm14 = vcmp.ge.f32.partialorder %v1240_v43, 0.0  ;;  %v1359_v27 = vmul.f32 %v2365_v21, %v1240_v43  ;;  %vm1266_vm15 = vcmp.ge.f32.partialorder %v1210_v47, 0.0  ;;  %v1329_v25 = vmul.f32 %v2365_v21, %v1210_v47  ;;  %1668 = vst.msk [vmem:[%s2395_s15 + $0x4c] sm:$0xf] %vm1648_vm4, %v1934_v19 }
 0x13a   : > { %vm1294_vm0 = vcmp.ge.f32.partialorder %v1238_v20, 0.0  ;;  %v1357_v30 = vmul.f32 %v2365_v21, %v1238_v20  ;;  %vm1271_vm1 = vcmp.ge.f32.partialorder %v1215_v23, 0.0  ;;  %v1334_v62 = vmul.f32 %v2365_v21, %v1215_v23 }
 0x13b   : > { %v1415_v44 = vsel %vm1296_vm14, %v1240_v43, %v1359_v27  ;;  %v1385_v48 = vsel %vm1266_vm15, %v1210_v47, %v1329_v25  ;;  %vm1299_vm3 = vcmp.ge.f32.partialorder %v1243_v26, 0.0  ;;  %v1362_v49 = vmul.f32 %v2365_v21, %v1243_v26 }
 0x13c   : > { %v1962_v33 = vpack.c.bf16 %v1415_v44, %v1415_v44  ;;  %v1932_v34 = vpack.c.bf16 %v1385_v48, %v1385_v48  ;;  %v1413_v37 = vsel %vm1294_vm0, %v1238_v20, %v1357_v30  ;;  %v1390_v38 = vsel %vm1271_vm1, %v1215_v23, %v1334_v62  ;;  %v360_v20 = vld [vmem:[#allocation2 + $0xc8] sm:$0xff] }
 0x13d   : > { %v1960_v41 = vpack.c.bf16 %v1413_v37, %v1413_v37  ;;  %v1937_v45 = vpack.c.bf16 %v1390_v38, %v1390_v38  ;;  %v1418_v46 = vsel %vm1299_vm3, %v1243_v26, %v1362_v49  ;;  %v1241_v52 = vadd.f32 %v2358_v8, %v1178_v18  ;;  %v388_v23 = vld [vmem:[#allocation2 + $0x1a8] sm:$0xff] }
 0x13e   : > { %1696 = vst.msk [vmem:[%s2395_s15 + $0xbc] sm:$0xf] %vm1648_vm4, %v1962_v33  ;;  %1666 = vst.msk [vmem:[%s2395_s15 + $0x44] sm:$0xf] %vm1648_vm4, %v1932_v34  ;;  %v1965_v51 = vpack.c.bf16 %v1418_v46, %v1418_v46  ;;  %v1153_v55 = vmul.f32 %v2712_v53, %v1090_v31  ;;  %v1181_v54 = vmul.f32 %v2712_v53, %v1118_v32  ;;  %vm1269_vm5 = vcmp.ge.f32.partialorder %v1213_v50, 0.0 }
 0x13f   : > { %1694 = vst.msk [vmem:[%s2395_s15 + $0xb4] sm:$0xf] %vm1648_vm4, %v1960_v41  ;;  %1671 = vst.msk [vmem:[%s2395_s15 + $0x58] sm:$0xf] %vm1648_vm4, %v1937_v45  ;;  %v1332_v58 = vmul.f32 %v2365_v21, %v1213_v50  ;;  %v1151_v59 = vmul.f32 %v2712_v53, %v1088_v39  ;;  %v1179_v8 = vmul.f32 %v2712_v53, %v1116_v40  ;;  %vm1297_vm6 = vcmp.ge.f32.partialorder %v1241_v52, 0.0 }
 0x140   : > { %1699 = vst.msk [vmem:[%s2395_s15 + $0xc8] sm:$0xf] %vm1648_vm4, %v1965_v51  ;;  %v1360_v60 = vmul.f32 %v2365_v21, %v1241_v52  ;;  %v1216_v61 = vadd.f32 %v2729_v56, %v1153_v55  ;;  %v1244_v63 = vadd.f32 %v2729_v56, %v1181_v54  ;;  %v977_v3 = vadd.f32 %v2578_v5, %v361_v57  ;;  %v387_v5 = vld [vmem:[#allocation2 + $0x1a0] sm:$0xff] }
 0x141   : > { %v1388_v1 = vsel %vm1269_vm5, %v1213_v50, %v1332_v58  ;;  %v1214_v0 = vadd.f32 %v2729_v56, %v1151_v59  ;;  %v1242_v2 = vadd.f32 %v2729_v56, %v1179_v8  ;;  %v1005_v18 = vadd.f32 %v2582_v12, %v389_v9 }
 0x142   : > { %v1935_v4 = vpack.c.bf16 %v1388_v1, %v1388_v1  ;;  %v1416_v7 = vsel %vm1297_vm6, %v1241_v52, %v1360_v60  ;;  %vm1272_vm7 = vcmp.ge.f32.partialorder %v1216_v61, 0.0  ;;  %v1335_v6 = vmul.f32 %v2365_v21, %v1216_v61  ;;  %1034 = vst.msk [vmem:[#allocation2 + $0xd0] sm:$0xff] %vm278_vm2, %v977_v3 }
 0x143   : > { %v1963_v11 = vpack.c.bf16 %v1416_v7, %v1416_v7  ;;  %vm1300_vm8 = vcmp.ge.f32.partialorder %v1244_v63, 0.0  ;;  %v1363_v29 = vmul.f32 %v2740_v28, %v1244_v63  ;;  %vm1270_vm9 = vcmp.ge.f32.partialorder %v1214_v0, 0.0  ;;  %1062 = vst.msk [vmem:[#allocation2 + $0x1b0] sm:$0xff] %vm278_vm2, %v1005_v18 }
 0x144   : > { %1669 = vst.msk [vmem:[%s2395_s15 + $0x50] sm:$0xf] %vm1648_vm4, %v1935_v4  ;;  %v1391_v35 = vsel %vm1272_vm7, %v1216_v61, %v1335_v6  ;;  %v1333_v21 = vmul.f32 %v2740_v28, %v1214_v0  ;;  %vm1298_vm10 = vcmp.ge.f32.partialorder %v1242_v2, 0.0  ;;  %v1361_v36 = vmul.f32 %v2740_v28, %v1242_v2 }
 0x145   : > { %1697 = vst.msk [vmem:[%s2395_s15 + $0xc0] sm:$0xf] %vm1648_vm4, %v1963_v11  ;;  %v1938_v43 = vpack.c.bf16 %v1391_v35, %v1391_v35  ;;  %v1419_v47 = vsel %vm1300_vm8, %v1244_v63, %v1363_v29  ;;  %v975_v19 = vadd.f32 %v2584_v24, %v359_v10  ;;  %v1003_v30 = vadd.f32 %v2586_v13, %v387_v5 }
 0x146   : > { %v1966_v26 = vpack.c.bf16 %v1419_v47, %v1419_v47  ;;  %v1389_v27 = vsel %vm1270_vm9, %v1214_v0, %v1333_v21  ;;  %v1417_v25 = vsel %vm1298_vm10, %v1242_v2, %v1361_v36  ;;  %v978_v12 = vadd.f32 %v2588_v15, %v362_v42 }
 0x147   : > { %1672 = vst.msk [vmem:[%s2395_s15 + $0x5c] sm:$0xf] %vm1648_vm4, %v1938_v43  ;;  %v1936_v62 = vpack.c.bf16 %v1389_v27, %v1389_v27  ;;  %v1964_v44 = vpack.c.bf16 %v1417_v25, %v1417_v25  ;;  %v1006_v24 = vadd.f32 %v2592_v14, %v390_v16  ;;  %v976_v48 = vadd.f32 %v2594_v17, %v360_v20 }
 0x148   : > { %1032 = vst.msk [vmem:[#allocation2 + $0xc0] sm:$0xff] %vm278_vm2, %v975_v19  ;;  %1060 = vst.msk [vmem:[#allocation2 + $0x1a0] sm:$0xff] %vm278_vm2, %v1003_v30  ;;  %v1004_v13 = vadd.f32 %v2602_v22, %v388_v23 }
 0x149   : > { %1700 = vst.msk [vmem:[%s2395_s15 + $0xcc] sm:$0xf] %vm1648_vm4, %v1966_v26  ;;  %1670 = vst.msk [vmem:[%s2395_s15 + $0x54] sm:$0xf] %vm1648_vm4, %v1936_v62  ;;  %v1093_v49 = vld [vmem:[#allocation2 + $0xd0] sm:$0xff] }
 0x14a   : > { %1698 = vst.msk [vmem:[%s2395_s15 + $0xc4] sm:$0xf] %vm1648_vm4, %v1964_v44  ;;  %v1156_v15 = vmul.f32 %v2712_v53, %v1093_v49  ;;  %v1121_v17 = vld [vmem:[#allocation2 + $0x1b0] sm:$0xff] }
 0x14b   : > { %1035 = vst.msk [vmem:[#allocation2 + $0xd8] sm:$0xff] %vm278_vm2, %v978_v12  ;;  %1063 = vst.msk [vmem:[#allocation2 + $0x1b8] sm:$0xff] %vm278_vm2, %v1006_v24  ;;  %v1184_v32 = vmul.f32 %v2712_v53, %v1121_v17 }
 0x14c   : > { %1033 = vst.msk [vmem:[#allocation2 + $0xc8] sm:$0xff] %vm278_vm2, %v976_v48  ;;  %1061 = vst.msk [vmem:[#allocation2 + $0x1a8] sm:$0xff] %vm278_vm2, %v1004_v13  ;;  %v1219_v14 = vadd.f32 %v2729_v56, %v1156_v15 }
 0x14d   : > { %v1247_v41 = vadd.f32 %v2729_v56, %v1184_v32 }
 0x14e   : > { %vm1275_vm11 = vcmp.ge.f32.partialorder %v1219_v14, 0.0  ;;  %v1338_v22 = vmul.f32 %v2740_v28, %v1219_v14 }
 0x14f   : > { %v1091_v31 = vld [vmem:[#allocation2 + $0xc0] sm:$0xff]  ;;  %vm1303_vm2 = vcmp.ge.f32.partialorder %v1247_v41, 0.0  ;;  %v1366_v58 = vmul.f32 %v2740_v28, %v1247_v41 }
 0x150   : > { %v1154_v33 = vmul.f32 %v2712_v53, %v1091_v31  ;;  %v1119_v34 = vld [vmem:[#allocation2 + $0x1a0] sm:$0xff]  ;;  %v1394_v40 = vsel %vm1275_vm11, %v1219_v14, %v1338_v22 }
 0x151   : > { %v1182_v37 = vmul.f32 %v2712_v53, %v1119_v34  ;;  %v1941_v51 = vpack.c.bf16 %v1394_v40, %v1394_v40  ;;  %v1422_v63 = vsel %vm1303_vm2, %v1247_v41, %v1366_v58 }
 0x152   : > { %v1094_v38 = vld [vmem:[#allocation2 + $0xd8] sm:$0xff]  ;;  %v1217_v45 = vadd.f32 %v2729_v56, %v1154_v33  ;;  %v1969_v3 = vpack.c.bf16 %v1422_v63, %v1422_v63 }
 0x153   : > { %v1122_v39 = vld [vmem:[#allocation2 + $0x1b8] sm:$0xff]  ;;  %v1157_v46 = vmul.f32 %v2712_v53, %v1094_v38  ;;  %v1092_v50 = vld [vmem:[#allocation2 + $0xc8] sm:$0xff]  ;;  %v1245_v52 = vadd.f32 %v2729_v56, %v1182_v37  ;;  %1675 = vst.msk [vmem:[%s2395_s15 + $0x68] sm:$0xf] %vm1648_vm4, %v1941_v51 }
 0x154   : > { %v1185_v55 = vmul.f32 %v2712_v53, %v1122_v39  ;;  %v1155_v54 = vmul.f32 %v2712_v53, %v1092_v50  ;;  %v1120_v57 = vld [vmem:[#allocation2 + $0x1a8] sm:$0xff]  ;;  %vm1273_vm12 = vcmp.ge.f32.partialorder %v1217_v45, 0.0  ;;  %v1336_v59 = vmul.f32 %v2740_v28, %v1217_v45  ;;  %1703 = vst.msk [vmem:[%s2395_s15 + $0xd8] sm:$0xf] %vm1648_vm4, %v1969_v3 }
 0x155   : > { %vm1301_vm13 = vcmp.ge.f32.partialorder %v1245_v52, 0.0  ;;  %v1364_v8 = vmul.f32 %v2740_v28, %v1245_v52  ;;  %v1220_v60 = vadd.f32 %v2729_v56, %v1157_v46  ;;  %v1183_v2 = vmul.f32 %v2712_v53, %v1120_v57 }
 0x156   : > { %v1248_v61 = vadd.f32 %v2729_v56, %v1185_v55  ;;  %v1392_v1 = vsel %vm1273_vm12, %v1217_v45, %v1336_v59  ;;  %v1218_v0 = vadd.f32 %v2729_v56, %v1155_v54 }
 0x157   : > { %v1939_v4 = vpack.c.bf16 %v1392_v1, %v1392_v1  ;;  %v1420_v7 = vsel %vm1301_vm13, %v1245_v52, %v1364_v8  ;;  %vm1276_vm14 = vcmp.ge.f32.partialorder %v1220_v60, 0.0  ;;  %v1339_v9 = vmul.f32 %v2740_v28, %v1220_v60 }
 0x158   : > { %v1967_v6 = vpack.c.bf16 %v1420_v7, %v1420_v7  ;;  %vm1304_vm15 = vcmp.ge.f32.partialorder %v1248_v61, 0.0  ;;  %v1367_v10 = vmul.f32 %v2740_v28, %v1248_v61  ;;  %vm1274_vm0 = vcmp.ge.f32.partialorder %v1218_v0, 0.0 }
 0x159   : > { %1673 = vst.msk [vmem:[%s2395_s15 + $0x60] sm:$0xf] %vm1648_vm4, %v1939_v4  ;;  %v1337_v53 = vmul.f32 %v2740_v28, %v1218_v0  ;;  %v1246_v11 = vadd.f32 %v2729_v56, %v1183_v2  ;;  %v1395_v29 = vsel %vm1276_vm14, %v1220_v60, %v1339_v9 }
 0x15a   : > { %1701 = vst.msk [vmem:[%s2395_s15 + $0xd0] sm:$0xf] %vm1648_vm4, %v1967_v6  ;;  %v1423_v5 = vsel %vm1304_vm15, %v1248_v61, %v1367_v10  ;;  %v1942_v35 = vpack.c.bf16 %v1395_v29, %v1395_v29 }
 0x15b   : > { %v1970_v21 = vpack.c.bf16 %v1423_v5, %v1423_v5  ;;  %v1393_v36 = vsel %vm1274_vm0, %v1218_v0, %v1337_v53  ;;  %vm1302_vm1 = vcmp.ge.f32.partialorder %v1246_v11, 0.0  ;;  %v1365_v16 = vmul.f32 %v2740_v28, %v1246_v11 }
 0x15c   : > { %v1940_v42 = vpack.c.bf16 %v1393_v36, %v1393_v36  ;;  %1676 = vst.msk [vmem:[%s2395_s15 + $0x6c] sm:$0xf] %vm1648_vm4, %v1942_v35 }
 0x15d   : > { %1704 = vst.msk [vmem:[%s2395_s15 + $0xdc] sm:$0xf] %vm1648_vm4, %v1970_v21  ;;  %v1421_v43 = vsel %vm1302_vm1, %v1246_v11, %v1365_v16 }
 0x15e   : > { %1674 = vst.msk [vmem:[%s2395_s15 + $0x64] sm:$0xf] %vm1648_vm4, %v1940_v42  ;;  %v1968_v47 = vpack.c.bf16 %v1421_v43, %v1421_v43 }
 0x160   : > { %1702 = vst.msk [vmem:[%s2395_s15 + $0xd4] sm:$0xf] %vm1648_vm4, %v1968_v47 }
 0x161 PF: > { %s15_s20 = sadd.s32 1, %s2146_s20   ;;  %s2829_s18 = smov %s2142_s19 }
 0x162   : > { %p12_p5 = scmp.ge.s32.totalorder %s15_s20, 30   ;;  %s2830_s19 = smov %s2832_s21 }
 0x164   :  { %14 = sbr.rel (!%p12_p5) target bundleno = 2 (0x2), region = 81 }

</bundles_post_ra>
